<compile_context>
chip_gen: v7x
topology: tpu7x:2x2x1
jax: 0.10.0
libtpu: 0.0.40
codegen_flags: <defaults>
</compile_context>

<pallas_src>
import functools

import jax
import jax.numpy as jnp
from jax.experimental import pallas as pl
from jax.experimental.pallas import tpu as pltpu


def _round_up(x, m):
    return (x + m - 1) // m * m


def _pad_to(x, shape):
    return jnp.pad(x, [(0, t - s) for s, t in zip(x.shape, shape)])


def text_encoder_kernel(x_ref, mask_ref, wconv_ref, bconv_ref,
                        w1_ref, b1_ref, w2_ref, b2_ref, out_ref,
                        *, window_size):
    """One batch tile per grid step.

    x_ref    : (tB, S, E)   bf16 embedded tokens for the current batch tile
    mask_ref : (tB, S)      f32, 1.0 = keep / 0.0 = masked
    wconv_ref: (K, E, Fp)   bf16 per-tap conv weights
    bconv_ref: (1, Fp)      f32
    w1_ref   : (Fp, Qp) bf16    b1_ref: (1, Qp) f32
    w2_ref   : (1, Qp)  f32     b2_ref: (1, 1)  f32
    out_ref  : (tB, Fp)     lane-dense
    """
    x = x_ref[...]                                      # (tB, S, E) bf16
    tB, S, E = x.shape
    pad = window_size // 2
    Fp = bconv_ref.shape[-1]

    def shifted(d):
        # shifted(d)[:, s, :] == x[:, s + d, :]  (zeros outside [0, S)).
        if d == 0:
            return x
        z = jnp.zeros((tB, abs(d), E), x.dtype)
        if d > 0:
            return jnp.concatenate([x[:, d:, :], z], axis=1)
        return jnp.concatenate([z, x[:, :S + d, :]], axis=1)

    # Conv1d: K accumulated flat (tB*S, E) @ (E, Fp) matmuls, f32 accumulation.
    # No im2col window is materialized; M = tB*S keeps the MXU rows full.
    acc = jnp.zeros((tB * S, Fp), jnp.float32)
    for k in range(window_size):
        xs = shifted(k - pad).reshape(tB * S, E)
        acc = acc + jnp.dot(xs, wconv_ref[k], preferred_element_type=jnp.float32)

    rep_f32 = jnp.maximum(acc + bconv_ref[...], 0.0)    # ReLU in f32 (v5e-safe)
    rep = rep_f32.astype(jnp.bfloat16)                  # reused for fc1 and pooling

    # Attentive pooling: a = q^T tanh(V r + v), flat (tB*S, .) matmul.
    h = jnp.tanh(jnp.dot(rep, w1_ref[...], preferred_element_type=jnp.float32)
                 + b1_ref[...])                         # (tB*S, Qp) f32
    a = jnp.sum(h * w2_ref[...], axis=-1).reshape(tB, S) + b2_ref[...]   # (tB, S)

    # Masked softmax over the sequence axis (f32).
    mask = mask_ref[...]
    a = jnp.where(mask == 0.0, -1e9, a)
    a = a - jnp.max(a, axis=-1, keepdims=True)
    e = jnp.exp(a)
    alpha = e * pl.reciprocal(jnp.sum(e, axis=-1, keepdims=True), approx=True)

    # Weighted pooling: VPU broadcast-mul + sublane reduce (idle slots under the
    # matmuls) instead of a batch of M=1 MXU matmuls.
    pooled = jnp.sum(alpha[:, :, None] * rep.reshape(tB, S, Fp).astype(jnp.float32),
                     axis=1)                            # (tB, Fp) f32
    out_ref[...] = pooled.astype(out_ref.dtype)


def prepare_params(emb_table, conv_w, conv_b, fc1_w, fc1_b, fc2_w, fc2_b):
    """Convert PyTorch-layout weights into the padded / bf16 layouts the kernel uses."""
    F, E, K = conv_w.shape             # torch Conv1d weight: (out, in, k)
    Q = fc1_w.shape[0]                 # torch Linear weight: (out, in)
    Fp, Qp = _round_up(F, 128), _round_up(Q, 128)
    w_kef = _pad_to(jnp.transpose(conv_w, (2, 1, 0)), (K, E, Fp))  # (K, E, Fp)
    return dict(
        embedding=emb_table,
        window_size=K,
        filter_num=F,
        conv_w=w_kef.astype(jnp.bfloat16),                               # per-tap
        conv_b=_pad_to(conv_b.reshape(1, F), (1, Fp)).astype(jnp.float32),
        fc1_w=_pad_to(fc1_w.T, (Fp, Qp)).astype(jnp.bfloat16),
        fc1_b=_pad_to(fc1_b.reshape(1, Q), (1, Qp)).astype(jnp.float32),
        fc2_w=_pad_to(fc2_w, (1, Qp)).astype(jnp.float32),
        fc2_b=fc2_b.reshape(1, 1).astype(jnp.float32),
    )


def text_encoder(x_tokens, mask, params, block_b=64, out_dtype=jnp.float32):
    """Embedding gather (bf16) in the wrapper; conv + attention pooling in the kernel.

    block_b should be sized per generation so block_b*S >= ~256-512 rows per grid
    step while the live intermediates (bf16 x, f32/bf16 rep at Fp lanes, f32 h at
    Qp lanes, double-buffered I/O) stay well inside VMEM — roughly 2x smaller on
    v7x (64 MiB) than on v5e/v6e (128 MiB).  Keep Bp/block_b >= 2 so the parallel
    batch axis can shard across both v7x TensorCores.
    """
    K = params['window_size']
    F = params['filter_num']
    B, S = x_tokens.shape
    E = params['embedding'].shape[1]
    Fp = params['conv_w'].shape[2]
    Qp = params['fc1_w'].shape[1]

    # Pad the batch to a multiple of the batch tile (keeps 2-D block shapes 8-aligned).
    Bp = _round_up(max(B, block_b), block_b)
    tok = jnp.pad(x_tokens, ((0, Bp - B), (0, 0)))
    msk = jnp.pad(mask.astype(jnp.float32), ((0, Bp - B), (0, 0)), constant_values=1.0)

    # Embedding gather; bf16 halves the HBM traffic the kernel re-reads.
    x_emb = params['embedding'][tok].astype(jnp.bfloat16)          # (Bp, S, E)

    grid = (Bp // block_b,)
    kernel = functools.partial(text_encoder_kernel, window_size=K)
    tiled2 = lambda i: (i, 0)
    res2 = lambda i: (0, 0)           # resident weights: same block every step
    res3 = lambda i: (0, 0, 0)

    out = pl.pallas_call(
        kernel,
        out_shape=jax.ShapeDtypeStruct((Bp, Fp), out_dtype),
        grid=grid,
        in_specs=[
            pl.BlockSpec((block_b, S, E), lambda i: (i, 0, 0)),    # activations (tiled)
            pl.BlockSpec((block_b, S), tiled2),                    # mask (tiled)
            pl.BlockSpec((K, E, Fp), res3),                        # conv weight (resident)
            pl.BlockSpec((1, Fp), res2),                           # conv bias
            pl.BlockSpec((Fp, Qp), res2),                          # fc1 weight
            pl.BlockSpec((1, Qp), res2),                           # fc1 bias
            pl.BlockSpec((1, Qp), res2),                           # fc2 weight
            pl.BlockSpec((1, 1), res2),                            # fc2 bias
        ],
        out_specs=pl.BlockSpec((block_b, Fp), tiled2),             # lane-dense output
        compiler_params=pltpu.CompilerParams(
            dimension_semantics=("parallel",),      # batch tiles across TCs (v7x: 2 TC)
            vmem_limit_bytes=32 * 1024 * 1024,      # ample headroom at these shapes
        ),
    )(x_emb, msk,
      params['conv_w'], params['conv_b'],
      params['fc1_w'], params['fc1_b'],
      params['fc2_w'], params['fc2_b'])
    return out[:B, :F]


if __name__ == "__main__":
    # Small, deterministic config.  B=64 with block_b=32 gives a 2-step grid and
    # block_b*S = 256 MXU rows per step.
    vocab, B, S = 50, 64, 8
    E, F, K, Q = 32, 32, 3, 16          # word_emb_dim, filter_num, window_size, query_dim

    key = jax.random.PRNGKey(0)
    ks = jax.random.split(key, 9)
    emb_table = jax.random.normal(ks[0], (vocab, E), jnp.float32) * 0.1
    conv_w_t  = jax.random.normal(ks[1], (F, E, K), jnp.float32) * 0.1   # torch (out, in, k)
    conv_b    = jax.random.normal(ks[2], (F,), jnp.float32) * 0.1
    fc1_w     = jax.random.normal(ks[3], (Q, F), jnp.float32) * 0.1      # torch (out, in)
    fc1_b     = jax.random.normal(ks[4], (Q,), jnp.float32) * 0.1
    fc2_w     = jax.random.normal(ks[5], (1, Q), jnp.float32) * 0.1
    fc2_b     = jax.random.normal(ks[6], (1,), jnp.float32) * 0.1
    x_tokens  = jax.random.randint(ks[7], (B, S), 0, vocab)
    lengths   = jax.random.randint(ks[8], (B,), 3, S + 1)
    mask = (jnp.arange(S)[None, :] < lengths[:, None]).astype(jnp.float32)

    params = prepare_params(emb_table, conv_w_t, conv_b, fc1_w, fc1_b, fc2_w, fc2_b)

    out = text_encoder(x_tokens, mask, params, block_b=32)   # grid = (2,)
    out = jax.block_until_ready(out)

    # ---- plain-JAX f32 reference (mirrors the PyTorch forward exactly) ----
    def ref_forward(x_tokens, mask):
        xe = emb_table[x_tokens]                               # (B, S, E)
        xe_t = jnp.transpose(xe, (0, 2, 1))                    # (B, E, S)  NCW
        conv = jax.lax.conv_general_dilated(
            xe_t, conv_w_t, window_strides=(1,), padding=[(K // 2, K // 2)],
            dimension_numbers=('NCH', 'OIH', 'NCH'))
        conv = conv + conv_b[None, :, None]
        rep = jnp.maximum(jnp.transpose(conv, (0, 2, 1)), 0.0)  # (B, S, F)
        h = jnp.tanh(rep @ fc1_w.T + fc1_b)                     # (B, S, Q)
        a = h @ fc2_w.T + fc2_b                                 # (B, S, 1)
        a = jnp.where(mask[..., None] == 0, -1e9, a)
        alpha = jax.nn.softmax(a, axis=1)
        return jnp.einsum('bso,bsf->bf', alpha, rep)

    ref = ref_forward(x_tokens, mask)
    assert out.shape == (B, F)
    # bf16 MXU inputs, bf16 rep reuse and approx EUP reciprocal shift numerics vs the
    # f32 reference, so the tolerance is relaxed relative to a pure-f32 check.
    assert jnp.allclose(out, ref, atol=1e-2, rtol=1e-2), (out, ref)

    print("KERNEL_OK")
</pallas_src>

<mosaic_0001>
module attributes {stable_mosaic.version = 11 : i64} {
  func.func @text_encoder_kernel(%arg0: i32, %arg1: memref<32x8x32xbf16, #tpu.memory_space<vmem>>, %arg2: memref<32x8xf32, #tpu.memory_space<vmem>>, %arg3: memref<3x32x128xbf16, #tpu.memory_space<vmem>>, %arg4: memref<1x128xf32, #tpu.memory_space<vmem>>, %arg5: memref<128x128xbf16, #tpu.memory_space<vmem>>, %arg6: memref<1x128xf32, #tpu.memory_space<vmem>>, %arg7: memref<1x128xf32, #tpu.memory_space<vmem>>, %arg8: memref<1x1xf32, #tpu.memory_space<vmem>>, %arg9: memref<32x128xf32, #tpu.memory_space<vmem>>) attributes {dimension_semantics = [#tpu.dimension_semantics<parallel>], iteration_bounds = array<i64: 2>, scalar_prefetch = 0 : i64, scratch_operands = 0 : i64, tpu.core_type = #tpu.core_type<tc>, window_params = [{transform_indices = @transform_0, window_bounds = array<i64: 32, 8, 32>}, {transform_indices = @transform_1, window_bounds = array<i64: 32, 8>}, {pipeline_mode = #tpu.pipeline_mode<synchronous>, transform_indices = @transform_2, window_bounds = array<i64: 3, 32, 128>}, {pipeline_mode = #tpu.pipeline_mode<synchronous>, transform_indices = @transform_3, window_bounds = array<i64: 1, 128>}, {pipeline_mode = #tpu.pipeline_mode<synchronous>, transform_indices = @transform_4, window_bounds = array<i64: 128, 128>}, {pipeline_mode = #tpu.pipeline_mode<synchronous>, transform_indices = @transform_5, window_bounds = array<i64: 1, 128>}, {pipeline_mode = #tpu.pipeline_mode<synchronous>, transform_indices = @transform_6, window_bounds = array<i64: 1, 128>}, {pipeline_mode = #tpu.pipeline_mode<synchronous>, transform_indices = @transform_7, window_bounds = array<i64: 1, 1>}, {transform_indices = @transform_8, window_bounds = array<i64: 32, 128>}]} {
    %c0 = arith.constant 0 : index
    %c0_0 = arith.constant 0 : index
    %c0_1 = arith.constant 0 : index
    %0 = vector.load %arg1[%c0, %c0_0, %c0_1] : memref<32x8x32xbf16, #tpu.memory_space<vmem>>, vector<32x8x32xbf16>
    %cst = arith.constant 0.000000e+00 : f32
    %1 = vector.broadcast %cst : f32 to vector<256x128xf32>
    %cst_2 = arith.constant 0.000000e+00 : bf16
    %2 = vector.broadcast %cst_2 : bf16 to vector<32x1x32xbf16>
    %3 = vector.extract_strided_slice %0 {offsets = [0, 0, 0], sizes = [32, 7, 32], strides = [1, 1, 1]} : vector<32x8x32xbf16> to vector<32x7x32xbf16>
    %4 = tpu.concatenate %2, %3 in 1 : vector<32x1x32xbf16>, vector<32x7x32xbf16> -> vector<32x8x32xbf16>
    %5 = vector.shape_cast %4 : vector<32x8x32xbf16> to vector<256x32xbf16>
    %c0_3 = arith.constant 0 : index
    %c0_4 = arith.constant 0 : index
    %c0_5 = arith.constant 0 : index
    %6 = vector.load %arg3[%c0_3, %c0_4, %c0_5] : memref<3x32x128xbf16, #tpu.memory_space<vmem>>, vector<1x32x128xbf16>
    %7 = vector.shape_cast %6 : vector<1x32x128xbf16> to vector<32x128xbf16>
    %cst_6 = arith.constant dense<0.000000e+00> : vector<256x128xf32>
    %8 = tpu.matmul %5, %7, %cst_6 {dimension_numbers = #tpu.dot_dimension_numbers<[1], [0], [0], [1], [0, 0, 1, 1], [], []>} : vector<256x32xbf16>, vector<32x128xbf16>, vector<256x128xf32> -> vector<256x128xf32>
    %9 = arith.addf %1, %8 : vector<256x128xf32>
    %10 = vector.shape_cast %0 : vector<32x8x32xbf16> to vector<256x32xbf16>
    %c1 = arith.constant 1 : index
    %c0_7 = arith.constant 0 : index
    %c0_8 = arith.constant 0 : index
    %11 = vector.load %arg3[%c1, %c0_7, %c0_8] : memref<3x32x128xbf16, #tpu.memory_space<vmem>>, vector<1x32x128xbf16>
    %12 = vector.shape_cast %11 : vector<1x32x128xbf16> to vector<32x128xbf16>
    %cst_9 = arith.constant dense<0.000000e+00> : vector<256x128xf32>
    %13 = tpu.matmul %10, %12, %cst_9 {dimension_numbers = #tpu.dot_dimension_numbers<[1], [0], [0], [1], [0, 0, 1, 1], [], []>} : vector<256x32xbf16>, vector<32x128xbf16>, vector<256x128xf32> -> vector<256x128xf32>
    %14 = arith.addf %9, %13 : vector<256x128xf32>
    %cst_10 = arith.constant 0.000000e+00 : bf16
    %15 = vector.broadcast %cst_10 : bf16 to vector<32x1x32xbf16>
    %16 = vector.extract_strided_slice %0 {offsets = [0, 1, 0], sizes = [32, 7, 32], strides = [1, 1, 1]} : vector<32x8x32xbf16> to vector<32x7x32xbf16>
    %17 = tpu.concatenate %16, %15 in 1 : vector<32x7x32xbf16>, vector<32x1x32xbf16> -> vector<32x8x32xbf16>
    %18 = vector.shape_cast %17 : vector<32x8x32xbf16> to vector<256x32xbf16>
    %c2 = arith.constant 2 : index
    %c0_11 = arith.constant 0 : index
    %c0_12 = arith.constant 0 : index
    %19 = vector.load %arg3[%c2, %c0_11, %c0_12] : memref<3x32x128xbf16, #tpu.memory_space<vmem>>, vector<1x32x128xbf16>
    %20 = vector.shape_cast %19 : vector<1x32x128xbf16> to vector<32x128xbf16>
    %cst_13 = arith.constant dense<0.000000e+00> : vector<256x128xf32>
    %21 = tpu.matmul %18, %20, %cst_13 {dimension_numbers = #tpu.dot_dimension_numbers<[1], [0], [0], [1], [0, 0, 1, 1], [], []>} : vector<256x32xbf16>, vector<32x128xbf16>, vector<256x128xf32> -> vector<256x128xf32>
    %22 = arith.addf %14, %21 : vector<256x128xf32>
    %c0_14 = arith.constant 0 : index
    %c0_15 = arith.constant 0 : index
    %23 = vector.load %arg4[%c0_14, %c0_15] : memref<1x128xf32, #tpu.memory_space<vmem>>, vector<1x128xf32>
    %24 = vector.broadcast %23 : vector<1x128xf32> to vector<256x128xf32>
    %25 = arith.addf %22, %24 : vector<256x128xf32>
    %cst_16 = arith.constant 0.000000e+00 : f32
    %26 = vector.broadcast %cst_16 : f32 to vector<256x128xf32>
    %27 = arith.maximumf %25, %26 : vector<256x128xf32>
    %28 = arith.truncf %27 : vector<256x128xf32> to vector<256x128xbf16>
    %c0_17 = arith.constant 0 : index
    %c0_18 = arith.constant 0 : index
    %29 = vector.load %arg5[%c0_17, %c0_18] : memref<128x128xbf16, #tpu.memory_space<vmem>>, vector<128x128xbf16>
    %cst_19 = arith.constant dense<0.000000e+00> : vector<256x128xf32>
    %30 = tpu.matmul %28, %29, %cst_19 {dimension_numbers = #tpu.dot_dimension_numbers<[1], [0], [0], [1], [0, 0, 1, 1], [], []>} : vector<256x128xbf16>, vector<128x128xbf16>, vector<256x128xf32> -> vector<256x128xf32>
    %c0_20 = arith.constant 0 : index
    %c0_21 = arith.constant 0 : index
    %31 = vector.load %arg6[%c0_20, %c0_21] : memref<1x128xf32, #tpu.memory_space<vmem>>, vector<1x128xf32>
    %32 = vector.broadcast %31 : vector<1x128xf32> to vector<256x128xf32>
    %33 = arith.addf %30, %32 : vector<256x128xf32>
    %34 = math.tanh %33 : vector<256x128xf32>
    %c0_22 = arith.constant 0 : index
    %c0_23 = arith.constant 0 : index
    %35 = vector.load %arg7[%c0_22, %c0_23] : memref<1x128xf32, #tpu.memory_space<vmem>>, vector<1x128xf32>
    %36 = vector.broadcast %35 : vector<1x128xf32> to vector<256x128xf32>
    %37 = arith.mulf %34, %36 : vector<256x128xf32>
    %cst_24 = arith.constant dense<0.000000e+00> : vector<256xf32>
    %38 = vector.multi_reduction <add>, %37, %cst_24 [1] : vector<256x128xf32> to vector<256xf32>
    %39 = vector.shape_cast %38 : vector<256xf32> to vector<32x8xf32>
    %c0_25 = arith.constant 0 : index
    %c0_26 = arith.constant 0 : index
    %40 = vector.load %arg8[%c0_25, %c0_26] : memref<1x1xf32, #tpu.memory_space<vmem>>, vector<1x1xf32>
    %41 = vector.broadcast %40 : vector<1x1xf32> to vector<32x8xf32>
    %42 = arith.addf %39, %41 : vector<32x8xf32>
    %c0_27 = arith.constant 0 : index
    %c0_28 = arith.constant 0 : index
    %43 = vector.load %arg2[%c0_27, %c0_28] : memref<32x8xf32, #tpu.memory_space<vmem>>, vector<32x8xf32>
    %cst_29 = arith.constant 0.000000e+00 : f32
    %44 = vector.broadcast %cst_29 : f32 to vector<32x8xf32>
    %45 = arith.cmpf oeq, %43, %44 : vector<32x8xf32>
    %cst_30 = arith.constant -1.000000e+09 : f32
    %46 = vector.broadcast %cst_30 : f32 to vector<32x8xf32>
    %47 = arith.select %45, %46, %42 : vector<32x8xi1>, vector<32x8xf32>
    %cst_31 = arith.constant dense<0xFF800000> : vector<32xf32>
    %48 = vector.multi_reduction <maximumf>, %47, %cst_31 [1] : vector<32x8xf32> to vector<32xf32>
    %49 = vector.shape_cast %48 : vector<32xf32> to vector<32x1xf32>
    %50 = vector.broadcast %49 : vector<32x1xf32> to vector<32x8xf32>
    %51 = arith.subf %47, %50 : vector<32x8xf32>
    %52 = math.exp %51 : vector<32x8xf32>
    %cst_32 = arith.constant dense<0.000000e+00> : vector<32xf32>
    %53 = vector.multi_reduction <add>, %52, %cst_32 [1] : vector<32x8xf32> to vector<32xf32>
    %54 = vector.shape_cast %53 : vector<32xf32> to vector<32x1xf32>
    %55 = tpu.reciprocal %54 {approx = true} : vector<32x1xf32> -> vector<32x1xf32>
    %56 = vector.broadcast %55 : vector<32x1xf32> to vector<32x8xf32>
    %57 = arith.mulf %52, %56 : vector<32x8xf32>
    %58 = vector.shape_cast %57 : vector<32x8xf32> to vector<32x8x1xf32>
    %59 = vector.shape_cast %28 : vector<256x128xbf16> to vector<32x8x128xbf16>
    %60 = arith.extf %59 : vector<32x8x128xbf16> to vector<32x8x128xf32>
    %61 = vector.broadcast %58 : vector<32x8x1xf32> to vector<32x8x128xf32>
    %62 = arith.mulf %61, %60 : vector<32x8x128xf32>
    %cst_33 = arith.constant dense<0.000000e+00> : vector<32x128xf32>
    %63 = vector.multi_reduction <add>, %62, %cst_33 [1] : vector<32x8x128xf32> to vector<32x128xf32>
    %c0_34 = arith.constant 0 : index
    %c0_35 = arith.constant 0 : index
    %64 = vector.load %arg9[%c0_34, %c0_35] : memref<32x128xf32, #tpu.memory_space<vmem>>, vector<32x128xf32>
    tpu.vector_store %arg9[%c0_34, %c0_35], %63 {strides = array<i32>} : memref<32x128xf32, #tpu.memory_space<vmem>>, vector<32x128xf32>,
    return
  }
  func.func @transform_0(%arg0: i32) -> (i32, i32, i32) {
    %c0_i32 = arith.constant 0 : i32
    %c0_i32_0 = arith.constant 0 : i32
    %c0_i32_1 = arith.constant 0 : i32
    return %arg0, %c0_i32, %c0_i32_0 : i32, i32, i32
  }
  func.func @transform_1(%arg0: i32) -> (i32, i32) {
    %c0_i32 = arith.constant 0 : i32
    %c0_i32_0 = arith.constant 0 : i32
    return %arg0, %c0_i32 : i32, i32
  }
  func.func @transform_2(%arg0: i32) -> (i32, i32, i32) {
    %c0_i32 = arith.constant 0 : i32
    %c0_i32_0 = arith.constant 0 : i32
    %c0_i32_1 = arith.constant 0 : i32
    %c0_i32_2 = arith.constant 0 : i32
    return %c0_i32, %c0_i32_0, %c0_i32_1 : i32, i32, i32
  }
  func.func @transform_3(%arg0: i32) -> (i32, i32) {
    %c0_i32 = arith.constant 0 : i32
    %c0_i32_0 = arith.constant 0 : i32
    %c0_i32_1 = arith.constant 0 : i32
    return %c0_i32, %c0_i32_0 : i32, i32
  }
  func.func @transform_4(%arg0: i32) -> (i32, i32) {
    %c0_i32 = arith.constant 0 : i32
    %c0_i32_0 = arith.constant 0 : i32
    %c0_i32_1 = arith.constant 0 : i32
    return %c0_i32, %c0_i32_0 : i32, i32
  }
  func.func @transform_5(%arg0: i32) -> (i32, i32) {
    %c0_i32 = arith.constant 0 : i32
    %c0_i32_0 = arith.constant 0 : i32
    %c0_i32_1 = arith.constant 0 : i32
    return %c0_i32, %c0_i32_0 : i32, i32
  }
  func.func @transform_6(%arg0: i32) -> (i32, i32) {
    %c0_i32 = arith.constant 0 : i32
    %c0_i32_0 = arith.constant 0 : i32
    %c0_i32_1 = arith.constant 0 : i32
    return %c0_i32, %c0_i32_0 : i32, i32
  }
  func.func @transform_7(%arg0: i32) -> (i32, i32) {
    %c0_i32 = arith.constant 0 : i32
    %c0_i32_0 = arith.constant 0 : i32
    %c0_i32_1 = arith.constant 0 : i32
    return %c0_i32, %c0_i32_0 : i32, i32
  }
  func.func @transform_8(%arg0: i32) -> (i32, i32) {
    %c0_i32 = arith.constant 0 : i32
    %c0_i32_0 = arith.constant 0 : i32
    return %arg0, %c0_i32 : i32, i32
  }
}

</mosaic_0001>

<bundles_post_ra>
// kernel: tpu_custom_call.1
= control target key start
LH: loop header
LB: loop body
LE: loop exit
PB: predicated region body
PF: predicated region fallthrough
CT: control target
= control target key end

     0   :  { %s5676_s0 = inlined_call_operand.vmem [shape: bf16[64,8,32], index: 0, kind: input, shape index: {}]   ;;  %s5677_s1 = inlined_call_operand.vmem [shape: f32[64,8], index: 1, kind: input, shape index: {}]   ;;  %s5678_s2 = inlined_call_operand.vmem [shape: bf16[3,32,128], index: 2, kind: input, shape index: {}]   ;;  %s5679_s3 = inlined_call_operand.vmem [shape: f32[1,128], index: 3, kind: input, shape index: {}]   ;;  %s5680_s4 = inlined_call_operand.vmem [shape: bf16[128,128], index: 4, kind: input, shape index: {}]   ;;  %s5681_s5 = inlined_call_operand.vmem [shape: f32[1,128], index: 5, kind: input, shape index: {}]   ;;  %s5682_s6 = inlined_call_operand.vmem [shape: f32[1,128], index: 6, kind: input, shape index: {}]   ;;  %s5683_s7 = inlined_call_operand.<no memory space> [shape: f32[1,1], index: 7, kind: input, shape index: {}]   ;;  %s5684_s8 = inlined_call_operand.hbm [shape: f32[64,128], index: 8, kind: output, shape index: {}]  }
   0x1   :  { %v13_v0 = vstv %s5683_s7 }
   0x2   :  { %14 = vst [vmem:[#allocation2] sm:$0x1] %v13_v0 }
   0x3   :  { %15 = vsyncpa [#allocation4], 0 }
   0x4   :  { %17 = vsyncpa [#allocation4 + $0x1], 0  ;;  %s4102_s29 = smov 0   ;;  %s4104_s30 = smov 0  }
   0x5   :  { %s4106_s9 = smov 0   ;;  %s4108_s10 = smov 0  }
   0x6 LB: > { %s4123_s7 = sadd.s32 4294967295, %s4048_s10   ;;  %s3270_s11 = sadd.s32 4294967294, %s4048_s10   ;;  %s4048_s10 = sphi %s4108_s10, %s5902_s10   ;;  %s4044_s9 = sphi %s4106_s9, %s5901_s9   ;;  %s4040_s30 = sphi %s4104_s30, %s5900_s30   ;;  %s4036_s29 = sphi %s4102_s29, %s5899_s29  }
   0x7   : > { %s4127_s12 = sadd.s32 1, %s4048_s10   ;;  %s208_s13 = sadd.s32 1, %s4044_s9 }
   0x8   : > { %s205_s14 = ssub.s32 %s4048_s10, %s4127_s12  ;;  %p218_p0 = scmp.ne.s32.totalorder %s4044_s9, %s4040_s30 }
   0x9   : > { %p206_p1 = scmp.eq.s32.totalorder %s205_s14, 0  ;;  %p219_p2 = scmp.eq.s32.totalorder %s4123_s7, 1 }
   0xa   : > { %p224_p3 = scmp.ne.s32.totalorder %s4040_s30, %s4036_s29  ;;  %p225_p4 = scmp.eq.s32.totalorder %s3270_s11, 1 }
   0xb   : > { %s4138_s15 = scalar_select %p206_p1, %s4044_s9, %s208_s13  }
   0xc   : > { %p4140_p5 = por %p219_p2, %p218_p0  ;;  %p4144_p6 = por %p225_p4, %p224_p3 }
   0xd   : > { %p3273_p7 = scmp.ge.s32.totalorder %s4048_s10, 1  ;;  %p279_p8 = scmp.lt.s32.totalorder %s4048_s10, 3 }
   0xf   : > { %p280_p9 = pnand %p3273_p7, %p279_p8 }
  0x11   : > { %283 = sbr.rel (%p280_p9) target bundleno = 1310 (0x51e), region = 52 }
  0x18   : > { %v3844_v1 = vld [vmem:[%s5678_s2] sm:$0xff]   ;;  %s3275_s20 = sshll.u32 %s4123_s7, 5  ;;  %v3845_v2 = vld [vmem:[%s5678_s2 + $0x8] sm:$0xff]   ;;  %vm717_vm0 = vsmask.f32 256  ;;  %vm716_vm1 = vcmask 1040384  }
  0x19   : > { %p319_p10 = scmp.lt.s32.totalorder %s3275_s20, 63  ;;  %3617 = vmatprep.subr.bf16.mxu0 %v3844_v1  ;;  %v4160_v3 = vld [vmem:[%s5678_s2 + $0x20] sm:$0xff]   ;;  %v3876_v4 = vld [vmem:[%s5678_s2 + $0x10] sm:$0xff]   ;;  %vm788_vm2 = vcmask 261120   ;;  %v3881_v5 = vld [vmem:[%s5678_s2 + $0x18] sm:$0xff]   ;;  %vm1395_vm4 = vcmask 1043456  }
  0x1a   : > { %3618 = vmatpush3.bf16.msra.mxu0 %v3844_v1  ;;  %3581 = vmatprep.subr.bf16.mxu1 %v3876_v4  ;;  %vm4219_vm3 = vmand %vm716_vm1, %vm717_vm0  ;;  %v4259_v57 = vld [vmem:[%s5680_s4] sm:$0xff]   ;;  %v3865_v62 = vld [vmem:[%s5678_s2 + $0x28] sm:$0xff]   ;;  %vm1396_vm5 = vsmask.f32 3328  ;;  %s3277_s11 = sshll.u32 %s4123_s7, 2  ;;  %vm2434_vm7 = vcmask 1041409  }
  0x1b   : > { %s5904_s20 = smov (!%p319_p10, %s3275_s20), 63  ;;  %3619 = vmatprep.subr.bf16.mxu0 %v3845_v2  ;;  %3582 = vmatpush3.bf16.msra.mxu1 %v3876_v4  ;;  %vm4668_vm6 = vmand %vm1395_vm4, %vm1396_vm5  ;;  %p325_p11 = scmp.lt.s32.totalorder %s3277_s11, 7  ;;  %vm2436_vm8 = vcmask 1042434   ;;  %vm2438_vm9 = vcmask 1043459   ;;  %vm2440_vm10 = vcmask 1044484   ;;  %vm2442_vm11 = vcmask 1045509  }
  0x1c   : > { %s3276_s25 = sshll.u32 %s5904_s20, 2  ;;  %3583 = vmatprep.subr.bf16.mxu1 %v3881_v5  ;;  %vm2444_vm12 = vcmask 1046534   ;;  %vm2446_vm13 = vcmask 1047559   ;;  %vm2477_vm15 = vcmask 64512   ;;  %s315_s20 = sand.u32 1, %s4040_s30  }
  0x1d   : > { %s4168_s13 = scalar_lea.vmem %s5676_s0, %s3276_s25  ;;  %s5906_s11 = smov (!%p325_p11, %s3277_s11), 7 }
  0x1e   : > { %3620 = vmatpush3.bf16.msra.mxu0 %v3845_v2  ;;  %v332_v6 = vld [vmem:[%s4168_s13] sm:$0xf]  ;;  %v333_v7 = vld [vmem:[%s4168_s13 + $0x4] sm:$0xf]  ;;  %v4176_v8 = vld [vmem:[%s4168_s13 + $0x8] sm:$0xf] }
  0x1f   : > { %v4178_v9 = vcombine.low %v332_v6, %v332_v6  ;;  %v4180_v10 = vcombine.low %v333_v7, %v333_v7  ;;  %3653 = vmatprep.subr.bf16.mxu0 %v4160_v3  ;;  %v4184_v11 = vld [vmem:[%s4168_s13 + $0xc] sm:$0xf]  ;;  %v3281_v12 = vcombine.low %v4176_v8, %v4176_v8  ;;  %v4189_v13 = vld [vmem:[%s4168_s13 + $0x10] sm:$0xf]  ;;  %v4192_v14 = vld [vmem:[%s4168_s13 + $0x14] sm:$0xf]  ;;  %v3315_v18 = vcombine.low %v332_v6, %v333_v7 }
  0x20   : > { %v3282_v15 = vcombine.low %v4184_v11, %v4184_v11  ;;  %v4198_v16 = vcombine.low %v4189_v13, %v4189_v13  ;;  %v4202_v17 = vcombine.low %v4192_v14, %v4192_v14  ;;  %3584 = vmatpush3.bf16.msra.mxu1 %v3881_v5  ;;  %v4226_v40 = vld [vmem:[%s4168_s13 + $0x18] sm:$0xf]  ;;  %v4233_v45 = vld [vmem:[%s4168_s13 + $0x1c] sm:$0xf]  ;;  %v4236_v46 = vld [vmem:[%s4168_s13 + $0x20] sm:$0xf] }
  0x21   : > { %v5715_v19 = vshrl.u32 %v4178_v9, 16  ;;  %v464_v20 = vshll.u32 %v4178_v9, 16  ;;  %v5714_v21 = vshrl.u32 %v4180_v10, 16  ;;  %v471_v22 = vshll.u32 %v4180_v10, 16  ;;  %3585 = vmatprep.mubr.msk.bf16.mxu1 %vm788_vm2, %v3315_v18  ;;  %v4239_v47 = vld [vmem:[%s4168_s13 + $0x24] sm:$0xf]  ;;  %3689 = vmatprep.subr.bf16.mxu1 %v4259_v57 }
  0x22   : > { %v475_v23 = vshrl.u32 %v3281_v12, 16  ;;  %v478_v24 = vshll.u32 %v3281_v12, 16  ;;  %v482_v25 = vshrl.u32 %v3282_v15, 16  ;;  %v485_v26 = vshll.u32 %v3282_v15, 16  ;;  %v4249_v52 = vld [vmem:[%s4168_s13 + $0x28] sm:$0xf] }
  0x23   : > { %v463_v27 = vrot.slane %v5715_v19, 7  ;;  %v470_v28 = vrot.slane %v5714_v21, 7  ;;  %v4213_v29 = vrot.slane %v464_v20, 1  ;;  %v4215_v30 = vrot.slane %v471_v22, 1  ;;  %v4297_v12 = vld [vmem:[%s4168_s13 + $0x2c] sm:$0xf] }
  0x24   : > { %v477_v32 = vrot.slane %v475_v23, 7  ;;  %v484_v33 = vrot.slane %v482_v25, 7  ;;  %v1303_v34 = vrot.slane %v478_v24, 1  ;;  %v1305_v35 = vrot.slane %v485_v26, 1  ;;  %s3274_s21 = sshll.u32 %s315_s20, 5  ;;  %s3502_s23 = sshll.u32 %s4123_s7, 9 }
  0x25   : > { %v466_v36 = vor.u32 %v464_v20, %v463_v27  ;;  %v473_v37 = vor.u32 %v471_v22, %v470_v28  ;;  %v5701_v38 = vshrl.u32 %v4198_v16, 16  ;;  %v5712_v39 = vshll.u32 %v4198_v16, 16  ;;  %s5598_s22 = scalar_lea.vmem [#allocation3], %s3274_s21  ;;  %s5625_s27 = scalar_lea.hbm %s5684_s8, %s3502_s23 }
  0x26   : > { %v480_v41 = vor.u32 %v478_v24, %v477_v32  ;;  %v487_v42 = vor.u32 %v485_v26, %v484_v33  ;;  %v4228_v43 = vor.u32 %v1303_v34, %v475_v23  ;;  %v4230_v44 = vor.u32 %v1305_v35, %v482_v25  ;;  %v4320_v33 = vld [vmem:[%s4168_s13 + $0x30] sm:$0xf]  ;;  %s3196_s24 = sshll.u32 %s5598_s22, 4  ;;  %s5635_s7 = scalar_lea.sflag [#allocation4], %s315_s20  ;;  %s5627_s24 = int_to_ptr.vmem [resolvable:$true] %s3196_s24 }
  0x27   : > { %v719_v48 = vsel %vm4219_vm3, 0, %v466_v36  ;;  %v720_v49 = vsel %vm4219_vm3, 0, %v473_v37  ;;  %v491_v50 = vrot.slane %v5701_v38, 7  ;;  %v5699_v51 = vshrl.u32 %v4202_v17, 16  ;;  %s3986_s28 = scalar_lea.vmem %s5627_s24, 512 }
  0x28   : > { %v3349_v53 = vcombine.low %v719_v48, %v720_v49  ;;  %v721_v54 = vsel %vm4219_vm3, 0, %v480_v41  ;;  %v722_v55 = vsel %vm4219_vm3, 0, %v487_v42  ;;  %v5710_v56 = vshll.u32 %v4202_v17, 16  ;;  %v4329_v41 = vld [vmem:[%s4168_s13 + $0x34] sm:$0xf]  ;;  %p3987_p12 = scmp.ne.s32.totalorder %s5627_s24, %s3986_s28 }
  0x29   : > { %v3350_v58 = vcombine.low %v721_v54, %v722_v55  ;;  %v494_v59 = vor.u32 %v5712_v39, %v491_v50  ;;  %v498_v60 = vrot.slane %v5699_v51, 7  ;;  %v4267_v61 = vcombine.low %v4226_v40, %v4226_v40  ;;  %v4496_v39 = vld [vmem:[%s4168_s13 + $0x64] sm:$0xf] }
  0x2a   : > { %3621 = vmatprep.mubr.msk.bf16.mxu0 %vm788_vm2, %v3349_v53  ;;  %v4275_v63 = vcombine.low %v4233_v45, %v4233_v45  ;;  %v4279_v0 = vcombine.low %v4236_v46, %v4236_v46  ;;  %v4283_v1 = vcombine.low %v4239_v47, %v4239_v47  ;;  %v4287_v2 = vcombine.low %v4249_v52, %v4249_v52  ;;  %v4339_v53 = vld [vmem:[%s4168_s13 + $0x38] sm:$0xf]  ;;  %p3988_p13 = pnand %p3987_p12, %p4140_p5 }
  0x2b   : > { %3622 = vmatmul.mubr.msk.bf16.vlgmr.msra.gmra.mrb[0].mxu0 %vm788_vm2, %v3350_v58  ;;  %v501_v4 = vor.u32 %v5710_v56, %v498_v60  ;;  %v723_v5 = vsel %vm4219_vm3, 0, %v494_v59  ;;  %v5698_v6 = vshrl.u32 %v4267_v61, 16  ;;  %v5708_v7 = vshll.u32 %v4267_v61, 16  ;;  %v4352_v60 = vld [vmem:[%s4168_s13 + $0x3c] sm:$0xf]  ;;  %5782 = vst [vmem:[#allocation15_spill] sm:$0xff] %v4496_v39 }
  0x2c   : > { %3654 = vmatpush3.bf16.msra.mxu0 %v4160_v3  ;;  %v5697_v15 = vshrl.u32 %v4275_v63, 16  ;;  %v5707_v18 = vshll.u32 %v4275_v63, 16  ;;  %v5689_v20 = vshrl.u32 %v4279_v0, 16  ;;  %v5696_v22 = vshll.u32 %v4279_v0, 16  ;;  %p3989_p0 = pneg %p3988_p13 }
  0x2d   : > { %v724_v23 = vsel %vm4219_vm3, 0, %v501_v4  ;;  %v505_v24 = vrot.slane %v5698_v6, 7  ;;  %v5688_v25 = vshrl.u32 %v4283_v1, 16  ;;  %v5693_v26 = vshll.u32 %v4283_v1, 16  ;;  %3655 = vmatprep.subr.bf16.mxu0 %v3865_v62  ;;  %v4355_v4 = vld [vmem:[%s4168_s13 + $0x40] sm:$0xf] }
  0x2e   : > { %v3351_v3 = vcombine.low %v723_v5, %v724_v23  ;;  %v512_v27 = vrot.slane %v5697_v15, 7  ;;  %v519_v28 = vrot.slane %v5689_v20, 7  ;;  %v4317_v32 = vcombine.low %v4297_v12, %v4297_v12  ;;  %v4410_v20 = vld [vmem:[%s4168_s13 + $0x4c] sm:$0xf] }
  0x2f   : > { %v508_v34 = vor.u32 %v5708_v7, %v505_v24  ;;  %v526_v35 = vrot.slane %v5688_v25, 7  ;;  %v5686_v36 = vshrl.u32 %v4287_v2, 16  ;;  %v5692_v37 = vshll.u32 %v4287_v2, 16  ;;  %5774 = vst [vmem:[#allocation7_spill] sm:$0xff] %v4410_v20  ;;  %v4473_v7 = vld [vmem:[%s4168_s13 + $0x58] sm:$0xf] }
  0x30   : > { %3625 = vmatprep.mubr.msk.bf16.mxu0 %vm788_vm2, %v3351_v3  ;;  %v515_v42 = vor.u32 %v5707_v18, %v512_v27  ;;  %v522_v48 = vor.u32 %v5696_v22, %v519_v28  ;;  %v5685_v49 = vshrl.u32 %v4317_v32, 16  ;;  %v5691_v50 = vshll.u32 %v4317_v32, 16  ;;  %3656 = vmatpush3.bf16.msra.mxu0 %v3865_v62  ;;  %5778 = vst [vmem:[#allocation11_spill] sm:$0xff] %v4473_v7 }
  0x31   : > { %v725_v54 = vsel %vm4219_vm3, 0, %v508_v34  ;;  %v529_v55 = vor.u32 %v5693_v26, %v526_v35  ;;  %v533_v58 = vrot.slane %v5686_v36, 7  ;;  %v4349_v59 = vcombine.low %v4320_v33, %v4320_v33  ;;  %v4373_v35 = vld [vmem:[%s4168_s13 + $0x44] sm:$0xf] }
  0x32   : > { %v726_v62 = vsel %vm4219_vm3, 0, %v515_v42  ;;  %v727_v5 = vsel %vm4219_vm3, 0, %v522_v48  ;;  %v540_v23 = vrot.slane %v5685_v49, 7  ;;  %v4365_v24 = vcombine.low %v4329_v41, %v4329_v41 }
  0x33   : > { %v3352_v3 = vcombine.low %v725_v54, %v726_v62  ;;  %v728_v27 = vsel %vm4219_vm3, 0, %v529_v55  ;;  %v536_v28 = vor.u32 %v5692_v37, %v533_v58  ;;  %v5687_v34 = vshrl.u32 %v4349_v59, 16 }
  0x34   : > { %v3353_v42 = vcombine.low %v727_v5, %v728_v27  ;;  %v543_v48 = vor.u32 %v5691_v50, %v540_v23  ;;  %v5694_v49 = vshll.u32 %v4349_v59, 16  ;;  %v5690_v36 = vshrl.u32 %v4365_v24, 16 }
  0x35   : > { %3626 = vmatmul.mubr.msk.bf16.gmra.mrb[4].mxu0 %vm788_vm2, %v3352_v3  ;;  %v729_v54 = vsel %vm4219_vm3, 0, %v536_v28  ;;  %v547_v55 = vrot.slane %v5687_v34, 7  ;;  %v5695_v58 = vshll.u32 %v4365_v24, 16  ;;  %v4387_v62 = vcombine.low %v4339_v53, %v4339_v53  ;;  %v4403_v28 = vld [vmem:[%s4168_s13 + $0x48] sm:$0xf] }
  0x36   : > { %3629 = vmatprep.mubr.msk.bf16.mxu0 %vm788_vm2, %v3353_v42  ;;  %v730_v5 = vsel %vm4219_vm3, 0, %v543_v48  ;;  %v554_v23 = vrot.slane %v5690_v36, 7  ;;  %v4396_v3 = vcombine.low %v4352_v60, %v4352_v60  ;;  %v4400_v27 = vcombine.low %v4355_v4, %v4355_v4  ;;  %5773 = vst [vmem:[#allocation6_spill] sm:$0xff] %v4403_v28 }
  0x37   : > { %v3354_v34 = vcombine.low %v729_v54, %v730_v5  ;;  %v550_v42 = vor.u32 %v5694_v49, %v547_v55  ;;  %v5700_v25 = vshrl.u32 %v4387_v62, 16  ;;  %v5706_v48 = vshll.u32 %v4387_v62, 16  ;;  %v4421_v54 = vld [vmem:[%s4168_s13 + $0x50] sm:$0xf] }
  0x38   : > { %v557_v36 = vor.u32 %v5695_v58, %v554_v23  ;;  %v5702_v50 = vshrl.u32 %v4396_v3, 16  ;;  %v5705_v37 = vshll.u32 %v4396_v3, 16  ;;  %v4418_v26 = vcombine.low %v4373_v35, %v4373_v35  ;;  %5775 = vst [vmem:[#allocation8_spill] sm:$0xff] %v4421_v54 }
  0x39   : > { %v731_v55 = vsel %vm4219_vm3, 0, %v550_v42  ;;  %v561_v5 = vrot.slane %v5700_v25, 7  ;;  %v5704_v49 = vshrl.u32 %v4400_v27, 16  ;;  %v5709_v23 = vshll.u32 %v4400_v27, 16 }
  0x3a   : > { %v732_v58 = vsel %vm4219_vm3, 0, %v557_v36  ;;  %v568_v22 = vrot.slane %v5702_v50, 7  ;;  %v5703_v15 = vshrl.u32 %v4418_v26, 16  ;;  %v5711_v6 = vshll.u32 %v4418_v26, 16 }
  0x3b   : > { %v3355_v51 = vcombine.low %v731_v55, %v732_v58  ;;  %v564_v42 = vor.u32 %v5706_v48, %v561_v5  ;;  %v575_v25 = vrot.slane %v5704_v49, 7  ;;  %v4441_v38 = vcombine.low %v4403_v28, %v4403_v28  ;;  %v4452_v55 = vld [vmem:[%s4168_s13 + $0x54] sm:$0xf]  ;;  %v4538_v28 = vld [vmem:[%s4168_s13 + $0x68] sm:$0xf] }
  0x3c   : > { %v571_v36 = vor.u32 %v5705_v37, %v568_v22  ;;  %v582_v50 = vrot.slane %v5703_v15, 7  ;;  %v4449_v58 = vcombine.low %v4410_v20, %v4410_v20  ;;  %5776 = vst [vmem:[#allocation9_spill] sm:$0xff] %v4452_v55  ;;  %v4456_v5 = vcombine.low %v4421_v54, %v4421_v54  ;;  %5790 = vst [vmem:[#allocation20_spill] sm:$0xff] %v4538_v28 }
  0x3d   : > { %3630 = vmatmul.mubr.msk.bf16.gmra.mrb[8].mxu0 %vm788_vm2, %v3354_v34  ;;  %v733_v22 = vsel %vm4219_vm3, 0, %v564_v42  ;;  %v578_v15 = vor.u32 %v5709_v23, %v575_v25  ;;  %v5713_v49 = vshrl.u32 %v4441_v38, 16  ;;  %v5719_v37 = vshll.u32 %v4441_v38, 16 }
  0x3e   : > { %5777 = vst [vmem:[#allocation10_spill] sm:$0xff] %v4456_v5  ;;  %3633 = vmatprep.mubr.msk.bf16.mxu0 %vm788_vm2, %v3355_v51  ;;  %v734_v48 = vsel %vm4219_vm3, 0, %v571_v36  ;;  %v585_v34 = vor.u32 %v5711_v6, %v582_v50  ;;  %v5717_v18 = vshrl.u32 %v4449_v58, 16  ;;  %v4481_v56 = vcombine.low %v4452_v55, %v4452_v55  ;;  %v4484_v36 = vld [vmem:[%s4168_s13 + $0x5c] sm:$0xf] }
  0x3f   : > { %v3356_v25 = vcombine.low %v733_v22, %v734_v48  ;;  %v735_v23 = vsel %vm4219_vm3, 0, %v578_v15  ;;  %v589_v51 = vrot.slane %v5713_v49, 7  ;;  %5780 = vst [vmem:[#allocation13_spill] sm:$0xff] %v4484_v36  ;;  %v4487_v50 = vld [vmem:[%s4168_s13 + $0x60] sm:$0xf]  ;;  %v5718_v22 = vshrl.u32 %v4456_v5, 16 }
  0x40   : > { %5779 = vst [vmem:[#allocation12_spill] sm:$0xff] %v4481_v56  ;;  %5781 = vst [vmem:[#allocation14_spill] sm:$0xff] %v4487_v50  ;;  %v736_v6 = vsel %vm4219_vm3, 0, %v585_v34  ;;  %v596_v48 = vrot.slane %v5717_v18, 7  ;;  %v5721_v19 = vshrl.u32 %v4481_v56, 16  ;;  %v5783_v54 = vshll.u32 %v4449_v58, 16 }
  0x41   : > { %v3357_v49 = vcombine.low %v735_v23, %v736_v6  ;;  %v592_v21 = vor.u32 %v5719_v37, %v589_v51  ;;  %v603_v18 = vrot.slane %v5718_v22, 7  ;;  %v4508_v15 = vcombine.low %v4473_v7, %v4473_v7 }
  0x42   : > { %v599_v34 = vor.u32 %v5783_v54, %v596_v48  ;;  %v4512_v6 = vcombine.low %v4484_v36, %v4484_v36  ;;  %v610_v51 = vrot.slane %v5721_v19, 7  ;;  %v4520_v54 = vcombine.low %v4487_v50, %v4487_v50 }
  0x43   : > { %5784 = vst [vmem:[#allocation16_spill] sm:$0xff] %v4508_v15  ;;  %v737_v23 = vsel %vm4219_vm3, 0, %v592_v21  ;;  %v4524_v48 = vcombine.low %v4496_v39, %v4496_v39  ;;  %v5788_v37 = vshll.u32 %v4456_v5, 16  ;;  %v5727_v21 = vshrl.u32 %v4508_v15, 16 }
  0x44   : > { %5785 = vst [vmem:[#allocation17_spill] sm:$0xff] %v4512_v6  ;;  %5786 = vst [vmem:[#allocation18_spill] sm:$0xff] %v4520_v54  ;;  %v738_v22 = vsel %vm4219_vm3, 0, %v599_v34  ;;  %v5734_v7 = vshll.u32 %v4508_v15, 16  ;;  %v5789_v50 = vshll.u32 %v4481_v56, 16  ;;  %v5731_v39 = vshrl.u32 %v4512_v6, 16 }
  0x45   : > { %5787 = vst [vmem:[#allocation19_spill] sm:$0xff] %v4524_v48  ;;  %v606_v42 = vor.u32 %v5788_v37, %v603_v18  ;;  %3634 = vmatmul.mubr.msk.bf16.gmra.mrb[12].mxu0 %vm788_vm2, %v3356_v25  ;;  %v3358_v19 = vcombine.low %v737_v23, %v738_v22  ;;  %v4541_v34 = vld [vmem:[%s4168_s13 + $0x6c] sm:$0xf]  ;;  %v617_v37 = vrot.slane %v5727_v21, 7  ;;  %v5732_v25 = vshrl.u32 %v4520_v54, 16 }
  0x46   : > { %v613_v36 = vor.u32 %v5789_v50, %v610_v51  ;;  %5791 = vst [vmem:[#allocation21_spill] sm:$0xff] %v4541_v34  ;;  %3637 = vmatprep.mubr.msk.bf16.mxu0 %vm788_vm2, %v3357_v49  ;;  %v4551_v22 = vld [vmem:[%s4168_s13 + $0x70] sm:$0xf]  ;;  %v624_v51 = vrot.slane %v5731_v39, 7  ;;  %v5733_v49 = vshrl.u32 %v4524_v48, 16  ;;  %v4565_v50 = vcombine.low %v4538_v28, %v4538_v28 }
  0x47   : > { %v739_v18 = vsel %vm4219_vm3, 0, %v606_v42  ;;  %5792 = vst [vmem:[#allocation22_spill] sm:$0xff] %v4551_v22  ;;  %v620_v21 = vor.u32 %v5734_v7, %v617_v37  ;;  %v631_v20 = vrot.slane %v5732_v25, 7  ;;  %v4576_v37 = vld [vmem:[%s4168_s13 + $0x74] sm:$0xf]  ;;  %v5796_v28 = vshll.u32 %v4524_v48, 16 }
  0x48   : > { %v740_v23 = vsel %vm4219_vm3, 0, %v613_v36  ;;  %v5793_v36 = vshll.u32 %v4512_v6, 16  ;;  %v638_v39 = vrot.slane %v5733_v49, 7  ;;  %5794 = vst [vmem:[#allocation23_spill] sm:$0xff] %v4576_v37  ;;  %v5740_v49 = vshrl.u32 %v4565_v50, 16 }
  0x49   : > { %v3359_v55 = vcombine.low %v739_v18, %v740_v23  ;;  %v4573_v18 = vcombine.low %v4541_v34, %v4541_v34  ;;  %v4580_v23 = vcombine.low %v4551_v22, %v4551_v22  ;;  %v741_v25 = vsel %vm4219_vm3, 0, %v620_v21  ;;  %v4603_v7 = vld [vmem:[%s4168_s13 + $0x78] sm:$0xf] }
  0x4a   : > { %v627_v56 = vor.u32 %v5793_v36, %v624_v51  ;;  %v5795_v51 = vshll.u32 %v4520_v54, 16  ;;  %v641_v34 = vor.u32 %v5796_v28, %v638_v39  ;;  %5797 = vst [vmem:[#allocation24_spill] sm:$0xff] %v4603_v7  ;;  %v4626_v5 = vcombine.low %v4603_v7, %v4603_v7 }
  0x4b   : > { %v5748_v22 = vshrl.u32 %v4573_v18, 16  ;;  %v5799_v15 = vshll.u32 %v4573_v18, 16  ;;  %v5813_v31 = vshll.u32 %v4283_v1, 16 }
  0x4c   : > { %v634_v36 = vor.u32 %v5795_v51, %v631_v20  ;;  %v742_v42 = vsel %vm4219_vm3, 0, %v627_v56  ;;  %v645_v20 = vrot.slane %v5740_v49, 7  ;;  %v4600_v51 = vcombine.low %v4576_v37, %v4576_v37  ;;  %v4606_v56 = vld [vmem:[%s4168_s13 + $0x7c] sm:$0xf]  ;;  %s3278_s13 = sshll.u32 %s5906_s11, 3  ;;  %s4051_s11 = smov [#allocation3]  }
  0x4d   : > { %3638 = vmatmul.mubr.msk.bf16.gmra.mrb[16].mxu0 %vm788_vm2, %v3358_v19  ;;  %v744_v39 = vsel %vm4219_vm3, 0, %v641_v34  ;;  %v652_v28 = vrot.slane %v5748_v22, 7  ;;  %v5754_v49 = vshll.u32 %v4580_v23, 16  ;;  %v3360_v6 = vcombine.low %v741_v25, %v742_v42  ;;  %s5286_s19 = scalar_lea.vmem %s5677_s1, %s3278_s13  ;;  %s3990_s13 = sshll.u32 %s4051_s11, 4  ;;  %s3991_s13 = int_to_ptr.vmem [resolvable:$false] %s3990_s13 }
  0x4e   : > { %v743_v21 = vsel %vm4219_vm3, 0, %v634_v36  ;;  %v5751_v36 = vshrl.u32 %v4580_v23, 16  ;;  %3641 = vmatprep.mubr.msk.bf16.mxu0 %vm788_vm2, %v3359_v55  ;;  %v5798_v37 = vshll.u32 %v4565_v50, 16  ;;  %v5752_v54 = vshrl.u32 %v4600_v51, 16  ;;  %s3992_s14 = scalar_lea.vmem %s3991_s13, 1024  ;;  %p3993_p1 = scmp.lt.s32.totalorder %s5627_s24, %s3991_s13 }
  0x4f   : > { %v667_v19 = vshll.u32 %v4600_v51, 16  ;;  %v655_v34 = vor.u32 %v5799_v15, %v652_v28  ;;  %v4630_v55 = vcombine.low %v4606_v56, %v4606_v56  ;;  %v3361_v25 = vcombine.low %v743_v21, %v744_v39  ;;  %p3994_p2 = scmp.lt.s32.totalorder %s3992_s14, %s3986_s28 }
  0x50   : > { %v648_v48 = vor.u32 %v5798_v37, %v645_v20  ;;  %v659_v22 = vrot.slane %v5751_v36, 7  ;;  %v666_v37 = vrot.slane %v5752_v54, 7  ;;  %v3316_v15 = vcombine.low %v4176_v8, %v4184_v11  ;;  %v3899_v20 = vld [vmem:[%s5680_s4 + $0x8] sm:$0xff]  }
  0x51   : > { %v671_v36 = vshrl.u32 %v4626_v5, 16  ;;  %v674_v21 = vshll.u32 %v4626_v5, 16  ;;  %v5800_v39 = vshrl.u32 %v4178_v9, 16  ;;  %v746_v54 = vsel %vm4219_vm3, 0, %v655_v34  ;;  %p3995_p3 = por %p3994_p2, %p3993_p1 }
  0x52   : > { %v745_v42 = vsel %vm4219_vm3, 0, %v648_v48  ;;  %v662_v28 = vor.u32 %v5754_v49, %v659_v22  ;;  %v669_v8 = vor.u32 %v667_v19, %v666_v37  ;;  %v5755_v11 = vshrl.u32 %v4630_v55, 16  ;;  %3586 = vmatmul.mubr.msk.bf16.vlgmr.msra.gmra.mrb[0].mxu1 %vm788_vm2, %v3316_v15  ;;  %v5870_v15 = vld [vmem:[#allocation21_spill] sm:$0xff] }
  0x53   : > { %v1300_v48 = vor.u32 %v4213_v29, %v5800_v39  ;;  %v681_v7 = vshll.u32 %v4630_v55, 16  ;;  %v673_v22 = vrot.slane %v671_v36, 7  ;;  %v5801_v49 = vshrl.u32 %v4180_v10, 16  ;;  %3690 = vmatpush3.bf16.msra.mxu1 %v4259_v57  ;;  %p3996_p4 = pnand %p3995_p3, %p3989_p0 }
  0x54   : > { %v747_v29 = vsel %vm4219_vm3, 0, %v662_v28  ;;  %v748_v34 = vsel %vm4219_vm3, 0, %v669_v8  ;;  %v680_v37 = vrot.slane %v5755_v11, 7  ;;  %v3317_v10 = vcombine.low %v4189_v13, %v4192_v14  ;;  %3691 = vmatprep.subr.bf16.mxu1 %v3899_v20 }
  0x55   : > { %v1302_v9 = vor.u32 %v4215_v30, %v5801_v49  ;;  %v3900_v30 = vld [vmem:[%s5680_s4 + $0x10] sm:$0xff]   ;;  %3642 = vmatmul.mubr.msk.bf16.gmra.mrb[20].mxu0 %vm788_vm2, %v3360_v6  ;;  %v3362_v57 = vcombine.low %v745_v42, %v746_v54  ;;  %v4680_v49 = vor.u32 %v674_v21, %v673_v22  ;;  %v1398_v28 = vsel %vm4668_vm6, %v1300_v48, 0 }
  0x56   : > { %3645 = vmatprep.mubr.msk.bf16.mxu0 %vm788_vm2, %v3361_v25  ;;  %v683_v13 = vor.u32 %v681_v7, %v680_v37  ;;  %v1400_v14 = vsel %vm4668_vm6, %v4228_v43, 0  ;;  %v1401_v6 = vsel %vm4668_vm6, %v4230_v44, 0  ;;  %3589 = vmatprep.mubr.msk.bf16.mxu1 %vm788_vm2, %v3317_v10  ;;  %v3318_v54 = vcombine.low %v4226_v40, %v4233_v45  ;;  %v3901_v45 = vld [vmem:[%s5680_s4 + $0x18] sm:$0xff]  }
  0x57   : > { %v1399_v39 = vsel %vm4668_vm6, %v1302_v9, 0  ;;  %v3363_v42 = vcombine.low %v747_v29, %v748_v34  ;;  %v4698_v48 = vcombine.low %v1400_v14, %v1401_v6  ;;  %v5804_v25 = vshll.u32 %v4198_v16, 16  ;;  %3692 = vmatpush3.bf16.msra.mxu1 %v3899_v20 }
  0x58   : > { %v5805_v22 = vshll.u32 %v4202_v17, 16  ;;  %v4704_v43 = vcombine.low %v1398_v28, %v1399_v39  ;;  %v5806_v37 = vshll.u32 %v4267_v61, 16  ;;  %v5807_v10 = vshll.u32 %v4275_v63, 16  ;;  %3693 = vmatprep.subr.bf16.mxu1 %v3900_v30 }
  0x59   : > { %v1307_v8 = vrot.slane %v5804_v25, 1  ;;  %v3319_v40 = vcombine.low %v4236_v46, %v4239_v47  ;;  %v749_v20 = vsel %vm4219_vm3, 0, %v4680_v49  ;;  %v750_v29 = vsel %vm4219_vm3, 0, %v683_v13 }
  0x5a   : > { %v1309_v9 = vrot.slane %v5805_v22, 1  ;;  %v1311_v44 = vrot.slane %v5806_v37, 1  ;;  %v1313_v11 = vrot.slane %v5807_v10, 1  ;;  %v5808_v34 = vshrl.u32 %v4198_v16, 16  ;;  %3590 = vmatmul.mubr.msk.bf16.gmra.mrb[4].mxu1 %vm788_vm2, %v3318_v54 }
  0x5b   : > { %v5809_v39 = vshrl.u32 %v4202_v17, 16  ;;  %v5810_v46 = vshrl.u32 %v4267_v61, 16  ;;  %v5811_v6 = vshrl.u32 %v4275_v63, 16  ;;  %v5812_v22 = vshll.u32 %v4279_v0, 16  ;;  %3593 = vmatprep.mubr.msk.bf16.mxu1 %vm788_vm2, %v3319_v40  ;;  %3694 = vmatpush3.bf16.msra.mxu1 %v3900_v30  ;;  %v3902_v40 = vld [vmem:[%s5680_s4 + $0x20] sm:$0xff]  }
  0x5c   : > { %v1308_v28 = vor.u32 %v1307_v8, %v5808_v34  ;;  %v1317_v13 = vrot.slane %v5813_v31, 1  ;;  %v5814_v61 = vshll.u32 %v4287_v2, 16  ;;  %v5815_v63 = vshll.u32 %v4317_v32, 16  ;;  %3695 = vmatprep.subr.bf16.mxu1 %v3901_v45 }
  0x5d   : > { %v1310_v14 = vor.u32 %v1309_v9, %v5809_v39  ;;  %v1312_v47 = vor.u32 %v1311_v44, %v5810_v46  ;;  %v1314_v25 = vor.u32 %v1313_v11, %v5811_v6  ;;  %v1315_v49 = vrot.slane %v5812_v22, 1  ;;  %3646 = vmatmul.mubr.msk.bf16.gmra.mrb[24].mxu0 %vm788_vm2, %v3362_v57 }
  0x5e   : > { %v1402_v16 = vsel %vm4668_vm6, %v1308_v28, 0  ;;  %v1319_v54 = vrot.slane %v5814_v61, 1  ;;  %v1321_v11 = vrot.slane %v5815_v63, 1  ;;  %v5816_v44 = vshrl.u32 %v4279_v0, 16  ;;  %3649 = vmatprep.mubr.msk.bf16.mxu0 %vm788_vm2, %v3363_v42 }
  0x5f   : > { %v1403_v17 = vsel %vm4668_vm6, %v1310_v14, 0  ;;  %v1404_v9 = vsel %vm4668_vm6, %v1312_v47, 0  ;;  %v1405_v37 = vsel %vm4668_vm6, %v1314_v25, 0  ;;  %v5817_v30 = vshrl.u32 %v4283_v1, 16  ;;  %3696 = vmatpush3.bf16.msra.mxu1 %v3901_v45 }
  0x60   : > { %v4742_v8 = vcombine.low %v1402_v16, %v1403_v17  ;;  %v1316_v10 = vor.u32 %v1315_v49, %v5816_v44  ;;  %v4754_v34 = vcombine.low %v1404_v9, %v1405_v37  ;;  %v5818_v39 = vshrl.u32 %v4287_v2, 16  ;;  %3697 = vmatprep.subr.bf16.mxu1 %v3902_v40  ;;  %v3903_v16 = vld [vmem:[%s5680_s4 + $0x28] sm:$0xff]  }
  0x61   : > { %v1318_v28 = vor.u32 %v1317_v13, %v5817_v30  ;;  %v5819_v46 = vshrl.u32 %v4317_v32, 16  ;;  %v3320_v0 = vcombine.low %v4249_v52, %v4297_v12  ;;  %v3321_v57 = vcombine.low %v4320_v33, %v4329_v41 }
  0x62   : > { %v1320_v14 = vor.u32 %v1319_v54, %v5818_v39  ;;  %v1406_v6 = vsel %vm4668_vm6, %v1316_v10, 0  ;;  %v5820_v1 = vshll.u32 %v4349_v59, 16  ;;  %v5821_v52 = vshll.u32 %v4365_v24, 16 }
  0x63   : > { %v1322_v47 = vor.u32 %v1321_v11, %v5819_v46  ;;  %v1407_v2 = vsel %vm4668_vm6, %v1318_v28, 0  ;;  %v5822_v33 = vshrl.u32 %v4349_v59, 16  ;;  %v5823_v31 = vshll.u32 %v4387_v62, 16  ;;  %3594 = vmatmul.mubr.msk.bf16.gmra.mrb[8].mxu1 %vm788_vm2, %v3320_v0 }
  0x64   : > { %v1323_v25 = vrot.slane %v5820_v1, 1  ;;  %v1408_v32 = vsel %vm4668_vm6, %v1320_v14, 0  ;;  %v1325_v12 = vrot.slane %v5821_v52, 1  ;;  %v4779_v22 = vcombine.low %v1406_v6, %v1407_v2  ;;  %3597 = vmatprep.mubr.msk.bf16.mxu1 %vm788_vm2, %v3321_v57  ;;  %3698 = vmatpush3.bf16.msra.mxu1 %v3902_v40 }
  0x65   : > { %v1409_v42 = vsel %vm4668_vm6, %v1322_v47, 0  ;;  %v1327_v13 = vrot.slane %v5823_v31, 1  ;;  %v3364_v17 = vcombine.low %v749_v20, %v750_v29  ;;  %v3322_v61 = vcombine.low %v4339_v53, %v4352_v60  ;;  %3699 = vmatprep.subr.bf16.mxu1 %v3903_v16 }
  0x66   : > { %v4781_v49 = vcombine.low %v1408_v32, %v1409_v42  ;;  %v1324_v41 = vor.u32 %v1323_v25, %v5822_v33  ;;  %v5824_v45 = vshrl.u32 %v4365_v24, 16  ;;  %v5825_v63 = vshll.u32 %v4396_v3, 16 }
  0x67   : > { %v5826_v9 = vshrl.u32 %v4387_v62, 16  ;;  %v5827_v44 = vshll.u32 %v4400_v27, 16  ;;  %v5828_v29 = vshll.u32 %v4418_v26, 16  ;;  %v5829_v24 = vshrl.u32 %v4396_v3, 16  ;;  %v3904_v3 = vld [vmem:[%s5680_s4 + $0x30] sm:$0xff]   ;;  %3650 = vmatmul.mubr.msk.bf16.gmra.mrb[28].mxu0 %vm788_vm2, %v3364_v17 }
  0x68   : > { %v1326_v54 = vor.u32 %v1325_v12, %v5824_v45  ;;  %v1329_v11 = vrot.slane %v5825_v63, 1  ;;  %v1410_v59 = vsel %vm4668_vm6, %v1324_v41, 0  ;;  %v5830_v30 = vshll.u32 %v4441_v38, 16  ;;  %3657 = vmatprep.mubr.msk.bf16.mxu0 %vm788_vm2, %v4704_v43  ;;  %v5836_v12 = vld [vmem:[#allocation10_spill] sm:$0xff]  ;;  %v5838_v43 = vld [vmem:[#allocation12_spill] sm:$0xff]  ;;  %3700 = vmatpush3.bf16.msra.mxu1 %v3903_v16 }
  0x69   : > { %v1328_v37 = vor.u32 %v1327_v13, %v5826_v9  ;;  %v1331_v20 = vrot.slane %v5827_v44, 1  ;;  %v1333_v53 = vrot.slane %v5828_v29, 1  ;;  %v5831_v62 = vshll.u32 %v4449_v58, 16  ;;  %3701 = vmatprep.subr.bf16.mxu1 %v3904_v3  ;;  %v5846_v29 = vld [vmem:[#allocation18_spill] sm:$0xff] }
  0x6a   : > { %v1411_v60 = vsel %vm4668_vm6, %v1326_v54, 0  ;;  %v1330_v10 = vor.u32 %v1329_v11, %v5829_v24  ;;  %v1335_v28 = vrot.slane %v5830_v30, 1  ;;  %v5832_v47 = vshrl.u32 %v4400_v27, 16  ;;  %v5841_v54 = vld [vmem:[#allocation16_spill] sm:$0xff]  ;;  %v5849_v30 = vld [vmem:[#allocation19_spill] sm:$0xff] }
  0x6b   : > { %v1337_v39 = vrot.slane %v5831_v62, 1  ;;  %v4814_v14 = vcombine.low %v1410_v59, %v1411_v60  ;;  %v1412_v46 = vsel %vm4668_vm6, %v1328_v37, 0  ;;  %v5833_v6 = vshrl.u32 %v4418_v26, 16  ;;  %v5844_v37 = vld [vmem:[#allocation17_spill] sm:$0xff]  ;;  %3598 = vmatmul.mubr.msk.bf16.gmra.mrb[12].mxu1 %vm788_vm2, %v3322_v61 }
  0x6c   : > { %v1332_v0 = vor.u32 %v1331_v20, %v5832_v47  ;;  %v1413_v40 = vsel %vm4668_vm6, %v1330_v10, 0  ;;  %v3323_v1 = vcombine.low %v4355_v4, %v4373_v35  ;;  %v5834_v25 = vshrl.u32 %v4441_v38, 16  ;;  %3702 = vmatpush3.bf16.msra.mxu1 %v3904_v3 }
  0x6d   : > { %v1334_v57 = vor.u32 %v1333_v53, %v5833_v6  ;;  %v5835_v2 = vshrl.u32 %v4449_v58, 16  ;;  %v4836_v32 = vcombine.low %v1412_v46, %v1413_v40  ;;  %v5837_v33 = vshll.u32 %v5836_v12, 16 }
  0x6e   : > { %v1336_v27 = vor.u32 %v1335_v28, %v5834_v25  ;;  %v1414_v42 = vsel %vm4668_vm6, %v1332_v0, 0  ;;  %v5839_v41 = vshll.u32 %v5838_v43, 16  ;;  %v5840_v17 = vshrl.u32 %v5836_v12, 16  ;;  %3601 = vmatprep.mubr.msk.bf16.mxu1 %vm788_vm2, %v3323_v1 }
  0x6f   : > { %v1338_v26 = vor.u32 %v1337_v39, %v5835_v2  ;;  %v1415_v52 = vsel %vm4668_vm6, %v1334_v57, 0  ;;  %v1339_v4 = vrot.slane %v5837_v33, 1  ;;  %v5842_v63 = vshll.u32 %v5841_v54, 16  ;;  %3658 = vmatmul.mubr.msk.bf16.vlgmr.msra.gmra.mrb[0].mxu0 %vm788_vm2, %v4698_v48 }
  0x70   : > { %v4844_v35 = vcombine.low %v1414_v42, %v1415_v52  ;;  %v1416_v38 = vsel %vm4668_vm6, %v1336_v27, 0  ;;  %v1341_v31 = vrot.slane %v5839_v41, 1  ;;  %v5843_v59 = vshrl.u32 %v5838_v43, 16  ;;  %v5856_v42 = vld [vmem:[#allocation7_spill] sm:$0xff]  ;;  %v5857_v52 = vld [vmem:[#allocation6_spill] sm:$0xff]  ;;  %3661 = vmatprep.mubr.msk.bf16.mxu0 %vm788_vm2, %v4742_v8 }
  0x71   : > { %v1417_v58 = vsel %vm4668_vm6, %v1338_v26, 0  ;;  %v1340_v45 = vor.u32 %v1339_v4, %v5840_v17  ;;  %v1343_v11 = vrot.slane %v5842_v63, 1  ;;  %v5845_v44 = vshll.u32 %v5844_v37, 16 }
  0x72   : > { %v4852_v13 = vcombine.low %v1416_v38, %v1417_v58  ;;  %v1342_v9 = vor.u32 %v1341_v31, %v5843_v59  ;;  %v5847_v53 = vshll.u32 %v5846_v29, 16  ;;  %v5848_v24 = vshrl.u32 %v5841_v54, 16  ;;  %v5862_v54 = vld [vmem:[#allocation8_spill] sm:$0xff] }
  0x73   : > { %v1345_v20 = vrot.slane %v5845_v44, 1  ;;  %v1418_v16 = vsel %vm4668_vm6, %v1340_v45, 0  ;;  %v5850_v28 = vshll.u32 %v5849_v30, 16  ;;  %v5851_v46 = vshrl.u32 %v5844_v37, 16  ;;  %v5861_v45 = vld [vmem:[#allocation9_spill] sm:$0xff] }
  0x74   : > { %v1347_v60 = vrot.slane %v5847_v53, 1  ;;  %v1344_v10 = vor.u32 %v1343_v11, %v5848_v24  ;;  %v1419_v39 = vsel %vm4668_vm6, %v1342_v9, 0  ;;  %v5852_v0 = vshrl.u32 %v5846_v29, 16 }
  0x75   : > { %v1349_v62 = vrot.slane %v5850_v28, 1  ;;  %v1346_v47 = vor.u32 %v1345_v20, %v5851_v46  ;;  %v5853_v6 = vshll.u32 %v4565_v50, 16  ;;  %v3397_v40 = vcombine.low %v1418_v16, %v1419_v39  ;;  %v5869_v28 = vld [vmem:[#allocation14_spill] sm:$0xff] }
  0x76   : > { %v1348_v61 = vor.u32 %v1347_v60, %v5852_v0  ;;  %v1420_v25 = vsel %vm4668_vm6, %v1344_v10, 0  ;;  %v5854_v27 = vshrl.u32 %v5849_v30, 16  ;;  %v5855_v2 = vshll.u32 %v4573_v18, 16  ;;  %v5868_v30 = vld [vmem:[#allocation15_spill] sm:$0xff]  ;;  %v5873_v46 = vld [vmem:[#allocation22_spill] sm:$0xff] }
  0x77   : > { %v1351_v57 = vrot.slane %v5853_v6, 1  ;;  %v3324_v12 = vcombine.low %v5857_v52, %v5856_v42  ;;  %v1421_v33 = vsel %vm4668_vm6, %v1346_v47, 0  ;;  %v5858_v4 = vshrl.u32 %v4565_v50, 16  ;;  %3662 = vmatmul.mubr.msk.bf16.gmra.mrb[4].mxu0 %vm788_vm2, %v4754_v34  ;;  %v5871_v34 = vld [vmem:[#allocation20_spill] sm:$0xff] }
  0x78   : > { %v1350_v1 = vor.u32 %v1349_v62, %v5854_v27  ;;  %v1353_v26 = vrot.slane %v5855_v2, 1  ;;  %v1422_v3 = vsel %vm4668_vm6, %v1348_v61, 0  ;;  %v3398_v58 = vcombine.low %v1420_v25, %v1421_v33  ;;  %3665 = vmatprep.mubr.msk.bf16.mxu0 %vm788_vm2, %v4779_v22  ;;  %v5872_v22 = vld [vmem:[#allocation23_spill] sm:$0xff]  ;;  %v4981_v33 = vld [vmem:[%s5679_s3] ss:$0 sm:$0xff] }
  0x79   : > { %v1352_v38 = vor.u32 %v1351_v57, %v5858_v4  ;;  %v5859_v48 = vshrl.u32 %v4573_v18, 16  ;;  %v5860_v31 = vshll.u32 %v4580_v23, 16  ;;  %v3325_v63 = vcombine.low %v5862_v54, %v5861_v45  ;;  %3602 = vmatmul.mubr.msk.bf16.gmra.mrb[16].mxu1 %vm788_vm2, %v3324_v12 }
  0x7a   : > { %v1423_v43 = vsel %vm4668_vm6, %v1350_v1, 0  ;;  %v1357_v8 = vrot.slane %v667_v19, 1  ;;  %v5863_v9 = vshrl.u32 %v4580_v23, 16  ;;  %v1359_v37 = vrot.slane %v674_v21, 1 }
  0x7b   : > { %v1354_v41 = vor.u32 %v1353_v26, %v5859_v48  ;;  %v1355_v17 = vrot.slane %v5860_v31, 1  ;;  %v3399_v11 = vcombine.low %v1422_v3, %v1423_v43  ;;  %v1424_v50 = vsel %vm4668_vm6, %v1352_v38, 0  ;;  %3605 = vmatprep.mubr.msk.bf16.mxu1 %vm788_vm2, %v3325_v63 }
  0x7c   : > { %v1361_v44 = vrot.slane %v681_v7, 1  ;;  %v5864_v29 = vshrl.u32 %v4600_v51, 16  ;;  %v1360_v60 = vor.u32 %v1359_v37, %v671_v36  ;;  %v5865_v23 = vshrl.u32 %v4630_v55, 16  ;;  %v5866_v36 = vld [vmem:[#allocation13_spill] sm:$0xff]  ;;  %v5867_v55 = vld [vmem:[#allocation11_spill] sm:$0xff] }
  0x7d   : > { %v1425_v59 = vsel %vm4668_vm6, %v1354_v41, 0  ;;  %v1356_v18 = vor.u32 %v1355_v17, %v5863_v9  ;;  %v3326_v10 = vcombine.low %v5867_v55, %v5866_v36  ;;  %v3327_v62 = vcombine.low %v5869_v28, %v5868_v30 }
  0x7e   : > { %v3400_v20 = vcombine.low %v1424_v50, %v1425_v59  ;;  %v1358_v53 = vor.u32 %v1357_v8, %v5864_v29  ;;  %v1362_v16 = vor.u32 %v1361_v44, %v5865_v23  ;;  %v1428_v51 = vsel %vm4668_vm6, %v1360_v60, 0 }
  0x7f   : > { %v1426_v19 = vsel %vm4668_vm6, %v1356_v18, 0  ;;  %3666 = vmatmul.mubr.msk.bf16.gmra.mrb[8].mxu0 %vm788_vm2, %v4781_v49  ;;  %v3328_v39 = vcombine.low %v5871_v34, %v5870_v15  ;;  %v3329_v47 = vcombine.low %v5873_v46, %v5872_v22  ;;  %v5874_v49 = vld [vmem:[#allocation24_spill] sm:$0xff] }
  0x80   : > { %v1427_v7 = vsel %vm4668_vm6, %v1358_v53, 0  ;;  %v1429_v24 = vsel %vm4668_vm6, %v1362_v16, 0  ;;  %3669 = vmatprep.mubr.msk.bf16.mxu0 %vm788_vm2, %v4814_v14  ;;  %v3330_v0 = vcombine.low %v5874_v49, %v4606_v56  ;;  %v3905_v56 = vld [vmem:[%s5680_s4 + $0x38] sm:$0xff]  }
  0x81   : > { %v3401_v21 = vcombine.low %v1426_v19, %v1427_v7  ;;  %v3402_v5 = vcombine.low %v1428_v51, %v1429_v24  ;;  %3606 = vmatmul.mubr.msk.bf16.gmra.mrb[20].mxu1 %vm788_vm2, %v3326_v10  ;;  %3703 = vmatprep.subr.bf16.mxu1 %v3905_v56 }
  0x82   : > { %3609 = vmatprep.mubr.msk.bf16.mxu1 %vm788_vm2, %v3327_v62  ;;  %3704 = vmatpush3.bf16.msra.mxu1 %v3905_v56 }
  0x87   : > { %3670 = vmatmul.mubr.msk.bf16.gmra.mrb[12].mxu0 %vm788_vm2, %v4836_v32 }
  0x88   : > { %3673 = vmatprep.mubr.msk.bf16.mxu0 %vm788_vm2, %v4844_v35 }
  0x89   : > { %3610 = vmatmul.mubr.msk.bf16.gmra.mrb[24].mxu1 %vm788_vm2, %v3328_v39 }
  0x8a   : > { %3613 = vmatprep.mubr.msk.bf16.mxu1 %vm788_vm2, %v3329_v47 }
  0x8f   : > { %3674 = vmatmul.mubr.msk.bf16.gmra.mrb[16].mxu0 %vm788_vm2, %v4852_v13 }
  0x90   : > { %3677 = vmatprep.mubr.msk.bf16.mxu0 %vm788_vm2, %v3397_v40 }
  0x91   : > { %3614 = vmatmul.mubr.msk.bf16.gmra.mrb[28].mxu1 %vm788_vm2, %v3330_v0 }
  0x97   : > { %3678 = vmatmul.mubr.msk.bf16.gmra.mrb[20].mxu0 %vm788_vm2, %v3398_v58 }
  0x98   : > { %3681 = vmatprep.mubr.msk.bf16.mxu0 %vm788_vm2, %v3399_v11 }
  0x9f   : > { %3682 = vmatmul.mubr.msk.bf16.gmra.mrb[24].mxu0 %vm788_vm2, %v3400_v20 }
  0xa0   : > { %3685 = vmatprep.mubr.msk.bf16.mxu0 %vm788_vm2, %v3401_v21 }
  0xa7   : > { %3686 = vmatmul.mubr.msk.bf16.gmra.mrb[28].mxu0 %vm788_vm2, %v3402_v5 }
 0x125   : > { %v3587_v14 = vpop.f32.mrb[0].mxu1 }
 0x126   : > { %v871_v32 = vpop.f32.mrb[1].mxu1 }
 0x127   : > { %v3588_v35 = vpop.f32.mrb[2].mxu1 }
 0x128   : > { %v874_v13 = vpop.f32.mrb[3].mxu1 }
 0x12d   : > { %v3591_v61 = vpop.f32.mrb[4].mxu1 }
 0x12e   : > { %v887_v6 = vpop.f32.mrb[5].mxu1 }
 0x12f   : > { %v3592_v57 = vpop.f32.mrb[6].mxu1 }
 0x130   : > { %v890_v40 = vpop.f32.mrb[7].mxu1 }
 0x136   : > { %v3595_v25 = vpop.f32.mrb[8].mxu1 }
 0x137   : > { %v903_v27 = vpop.f32.mrb[9].mxu1 }
 0x138   : > { %v3596_v1 = vpop.f32.mrb[10].mxu1 }
 0x139   : > { %v906_v2 = vpop.f32.mrb[11].mxu1 }
 0x13e   : > { %v4972_v26 = vpop.f32.mrb[12].mxu1 }
 0x13f   : > { %v4974_v42 = vpop.f32.mrb[13].mxu1 }
 0x140   : > { %v4976_v52 = vpop.f32.mrb[14].mxu1 }
 0x141   : > { %v4983_v3 = vpop.f32.mrb[15].mxu1 }
 0x142   : > { %v3659_v12 = vpop.f32.mrb[0].mxu0 }
 0x143   : > { %v3737_v4 = vadd.f32 %v3659_v12, %v3587_v14  ;;  %v1609_v38 = vpop.f32.mrb[1].mxu0 }
 0x144   : > { %v3738_v58 = vadd.f32 %v1609_v38, %v871_v32  ;;  %v3660_v43 = vpop.f32.mrb[2].mxu0 }
 0x145   : > { %v1777_v48 = vadd.f32 %v3737_v4, %v4981_v33  ;;  %v3739_v41 = vadd.f32 %v3660_v43, %v3588_v35  ;;  %v1612_v31 = vpop.f32.mrb[3].mxu0 }
 0x146   : > { %v1775_v17 = vadd.f32 %v3738_v58, %v4981_v33  ;;  %v3740_v45 = vadd.f32 %v1612_v31, %v874_v13 }
 0x147   : > { %v1778_v54 = vadd.f32 %v3739_v41, %v4981_v33  ;;  %v4993_v8 = vmax.f32 %v1777_v48, 0.0 }
 0x148   : > { %v1776_v11 = vadd.f32 %v3740_v45, %v4981_v33  ;;  %v4999_v18 = vmax.f32 %v1775_v17, 0.0 }
 0x149   : > { %v4995_v59 = vmax.f32 %v1778_v54, 0.0 }
 0x14a   : > { %v5001_v37 = vmax.f32 %v1776_v11, 0.0  ;;  %v3663_v44 = vpop.f32.mrb[4].mxu0 }
 0x14b   : > { %v1840_v29 = vpack.c.bf16 %v4995_v59, %v4993_v8  ;;  %v3741_v53 = vadd.f32 %v3663_v44, %v3591_v61  ;;  %v1625_v19 = vpop.f32.mrb[5].mxu0 }
 0x14c   : > { %v4988_v63 = vpop.f32.mrb[16].mxu1  ;;  %v3742_v60 = vadd.f32 %v1625_v19, %v887_v6  ;;  %v3664_v23 = vpop.f32.mrb[6].mxu0  ;;  %v1839_v16 = vpack.c.bf16 %v5001_v37, %v4999_v18 }
 0x14d   : > { %v4991_v50 = vpop.f32.mrb[17].mxu1  ;;  %v1781_v7 = vadd.f32 %v3741_v53, %v4981_v33  ;;  %v3743_v21 = vadd.f32 %v3664_v23, %v3592_v57  ;;  %v1628_v51 = vpop.f32.mrb[7].mxu0 }
 0x14e   : > { %v4997_v9 = vpop.f32.mrb[18].mxu1  ;;  %v1779_v24 = vadd.f32 %v3742_v60, %v4981_v33  ;;  %v3744_v5 = vadd.f32 %v1628_v51, %v890_v40  ;;  %3705 = vmatprep.mubr.bf16.mxu1 %v1839_v16 }
 0x14f   : > { %v5003_v20 = vpop.f32.mrb[19].mxu1  ;;  %v1782_v36 = vadd.f32 %v3743_v21, %v4981_v33  ;;  %3706 = vmatmul.mubr.bf16.vlgmr.msra.gmra.mrb[32].mxu1 %v1840_v29  ;;  %v5017_v28 = vmax.f32 %v1781_v7, 0.0 }
 0x150   : > { %v1780_v10 = vadd.f32 %v3744_v5, %v4981_v33  ;;  %v5023_v34 = vmax.f32 %v1779_v24, 0.0 }
 0x151   : > { %v5019_v62 = vmax.f32 %v1782_v36, 0.0 }
 0x152   : > { %v5025_v39 = vmax.f32 %v1780_v10, 0.0  ;;  %v3667_v22 = vpop.f32.mrb[8].mxu0 }
 0x153   : > { %v3745_v47 = vadd.f32 %v3667_v22, %v3595_v25  ;;  %v1641_v49 = vpop.f32.mrb[9].mxu0  ;;  %v1842_v0 = vpack.c.bf16 %v5019_v62, %v5017_v28 }
 0x154   : > { %v5012_v55 = vpop.f32.mrb[20].mxu1  ;;  %v3746_v56 = vadd.f32 %v1641_v49, %v903_v27  ;;  %v3668_v14 = vpop.f32.mrb[10].mxu0  ;;  %v1841_v32 = vpack.c.bf16 %v5025_v39, %v5023_v34 }
 0x155   : > { %v5015_v30 = vpop.f32.mrb[21].mxu1  ;;  %v1785_v35 = vadd.f32 %v3745_v47, %v4981_v33  ;;  %v3747_v13 = vadd.f32 %v3668_v14, %v3596_v1  ;;  %v1644_v61 = vpop.f32.mrb[11].mxu0 }
 0x156   : > { %v5021_v15 = vpop.f32.mrb[22].mxu1  ;;  %v1783_v6 = vadd.f32 %v3746_v56, %v4981_v33  ;;  %v3748_v57 = vadd.f32 %v1644_v61, %v906_v2  ;;  %3709 = vmatprep.mubr.bf16.mxu1 %v1841_v32 }
 0x157   : > { %v5027_v46 = vpop.f32.mrb[23].mxu1  ;;  %v1786_v40 = vadd.f32 %v3747_v13, %v4981_v33  ;;  %3710 = vmatmul.mubr.bf16.gmra.mrb[36].mxu1 %v1842_v0  ;;  %v5041_v4 = vmax.f32 %v1785_v35, 0.0 }
 0x158   : > { %v1784_v12 = vadd.f32 %v3748_v57, %v4981_v33  ;;  %v5047_v1 = vmax.f32 %v1783_v6, 0.0 }
 0x159   : > { %v5043_v38 = vmax.f32 %v1786_v40, 0.0 }
 0x15a   : > { %v5049_v43 = vmax.f32 %v1784_v12, 0.0  ;;  %v3671_v2 = vpop.f32.mrb[12].mxu0 }
 0x15b   : > { %v3749_v41 = vadd.f32 %v3671_v2, %v4972_v26  ;;  %v1657_v31 = vpop.f32.mrb[13].mxu0  ;;  %v1844_v17 = vpack.c.bf16 %v5043_v38, %v5041_v4 }
 0x15c   : > { %v5036_v25 = vpop.f32.mrb[24].mxu1  ;;  %v3750_v45 = vadd.f32 %v1657_v31, %v4974_v42  ;;  %v3672_v54 = vpop.f32.mrb[14].mxu0  ;;  %v1843_v11 = vpack.c.bf16 %v5049_v43, %v5047_v1 }
 0x15d   : > { %v5039_v27 = vpop.f32.mrb[25].mxu1  ;;  %v1789_v44 = vadd.f32 %v3749_v41, %v4981_v33  ;;  %v3751_v29 = vadd.f32 %v3672_v54, %v4976_v52  ;;  %v1660_v53 = vpop.f32.mrb[15].mxu0 }
 0x15e   : > { %v5045_v58 = vpop.f32.mrb[26].mxu1  ;;  %v1787_v19 = vadd.f32 %v3750_v45, %v4981_v33  ;;  %v3752_v60 = vadd.f32 %v1660_v53, %v4983_v3  ;;  %3713 = vmatprep.mubr.bf16.mxu1 %v1843_v11 }
 0x15f   : > { %v5051_v48 = vpop.f32.mrb[27].mxu1  ;;  %v1790_v26 = vadd.f32 %v3751_v29, %v4981_v33  ;;  %3714 = vmatmul.mubr.bf16.gmra.mrb[40].mxu1 %v1844_v17  ;;  %v5069_v7 = vmax.f32 %v1789_v44, 0.0 }
 0x160   : > { %v1788_v42 = vadd.f32 %v3752_v60, %v4981_v33  ;;  %v5075_v51 = vmax.f32 %v1787_v19, 0.0 }
 0x161   : > { %v5071_v21 = vmax.f32 %v1790_v26, 0.0 }
 0x162   : > { %v5077_v24 = vmax.f32 %v1788_v42, 0.0  ;;  %v3675_v3 = vpop.f32.mrb[16].mxu0 }
 0x163   : > { %v3753_v36 = vadd.f32 %v3675_v3, %v4988_v63  ;;  %v1673_v10 = vpop.f32.mrb[17].mxu0  ;;  %v1846_v22 = vpack.c.bf16 %v5071_v21, %v5069_v7 }
 0x164   : > { %v5064_v23 = vpop.f32.mrb[28].mxu1  ;;  %v3754_v47 = vadd.f32 %v1673_v10, %v4991_v50  ;;  %v3676_v49 = vpop.f32.mrb[18].mxu0  ;;  %v1845_v0 = vpack.c.bf16 %v5077_v24, %v5075_v51 }
 0x165   : > { %v5067_v16 = vpop.f32.mrb[29].mxu1  ;;  %v1793_v56 = vadd.f32 %v3753_v36, %v4981_v33  ;;  %v3755_v14 = vadd.f32 %v3676_v49, %v4997_v9  ;;  %v1676_v32 = vpop.f32.mrb[19].mxu0 }
 0x166   : > { %v5073_v52 = vpop.f32.mrb[30].mxu1  ;;  %v1791_v35 = vadd.f32 %v3754_v47, %v4981_v33  ;;  %v3756_v13 = vadd.f32 %v1676_v32, %v5003_v20  ;;  %3717 = vmatprep.mubr.bf16.mxu1 %v1845_v0 }
 0x167   : > { %v5079_v5 = vpop.f32.mrb[31].mxu1  ;;  %v1794_v63 = vadd.f32 %v3755_v14, %v4981_v33  ;;  %3718 = vmatmul.mubr.bf16.gmra.mrb[44].mxu1 %v1846_v22  ;;  %v5093_v50 = vmax.f32 %v1793_v56, 0.0 }
 0x168   : > { %v1792_v61 = vadd.f32 %v3756_v13, %v4981_v33  ;;  %v5097_v57 = vmax.f32 %v1791_v35, 0.0 }
 0x169   : > { %v5095_v6 = vmax.f32 %v1794_v63, 0.0 }
 0x16a   : > { %v5099_v40 = vmax.f32 %v1792_v61, 0.0  ;;  %v3679_v9 = vpop.f32.mrb[20].mxu0 }
 0x16b   : > { %v3757_v12 = vadd.f32 %v3679_v9, %v5012_v55  ;;  %v1689_v2 = vpop.f32.mrb[21].mxu0  ;;  %v1848_v20 = vpack.c.bf16 %v5095_v6, %v5093_v50 }
 0x16c   : > { %v3758_v41 = vadd.f32 %v1689_v2, %v5015_v30  ;;  %v3680_v31 = vpop.f32.mrb[22].mxu0  ;;  %v1847_v17 = vpack.c.bf16 %v5099_v40, %v5097_v57 }
 0x16d   : > { %v1797_v45 = vadd.f32 %v3757_v12, %v4981_v33  ;;  %v3759_v54 = vadd.f32 %v3680_v31, %v5021_v15  ;;  %v1692_v11 = vpop.f32.mrb[23].mxu0 }
 0x16e   : > { %v1795_v44 = vadd.f32 %v3758_v41, %v4981_v33  ;;  %v3760_v29 = vadd.f32 %v1692_v11, %v5027_v46  ;;  %3721 = vmatprep.mubr.bf16.mxu1 %v1847_v17 }
 0x16f   : > { %v1798_v55 = vadd.f32 %v3759_v54, %v4981_v33  ;;  %3722 = vmatmul.mubr.bf16.gmra.mrb[48].mxu1 %v1848_v20  ;;  %v5113_v30 = vmax.f32 %v1797_v45, 0.0 }
 0x170   : > { %v1796_v53 = vadd.f32 %v3760_v29, %v4981_v33  ;;  %v5117_v60 = vmax.f32 %v1795_v44, 0.0 }
 0x171   : > { %5875 = vst [vmem:[#allocation10_spill] sm:$0xff] %v5113_v30  ;;  %v5115_v19 = vmax.f32 %v1798_v55, 0.0 }
 0x172   : > { %5877 = vst [vmem:[#allocation16_spill] sm:$0xff] %v5117_v60  ;;  %v5119_v26 = vmax.f32 %v1796_v53, 0.0  ;;  %v3683_v15 = vpop.f32.mrb[24].mxu0  ;;  %v4050_v53 = vmov 0  }
 0x173   : > { %5876 = vst [vmem:[#allocation12_spill] sm:$0xff] %v5115_v19  ;;  %v3761_v42 = vadd.f32 %v3683_v15, %v5036_v25  ;;  %v1705_v3 = vpop.f32.mrb[25].mxu0  ;;  %v1850_v46 = vpack.c.bf16 %v5115_v19, %v5113_v30  ;;  %3843 = vset.pattern.permute.xlu0 %v4050_v53  ;;  %v2264_v19 = vld [vmem:[%s5286_s19] sm:$0xff] }
 0x174   : > { %5878 = vst [vmem:[#allocation17_spill] sm:$0xff] %v5119_v26  ;;  %v3762_v36 = vadd.f32 %v1705_v3, %v5039_v27  ;;  %v3684_v10 = vpop.f32.mrb[26].mxu0  ;;  %v1849_v22 = vpack.c.bf16 %v5119_v26, %v5117_v60  ;;  %vm2268_vm14 = vcmp.eq.f32.partialorder %v2264_v19, 0.0 }
 0x175   : > { %v1801_v47 = vadd.f32 %v3761_v42, %v4981_v33  ;;  %v3763_v49 = vadd.f32 %v3684_v10, %v5045_v58  ;;  %v1708_v0 = vpop.f32.mrb[27].mxu0 }
 0x176   : > { %v1799_v56 = vadd.f32 %v3762_v36, %v4981_v33  ;;  %v3764_v14 = vadd.f32 %v1708_v0, %v5051_v48  ;;  %3725 = vmatprep.mubr.bf16.mxu1 %v1849_v22 }
 0x177   : > { %v1802_v25 = vadd.f32 %v3763_v49, %v4981_v33  ;;  %3726 = vmatmul.mubr.bf16.gmra.mrb[52].mxu1 %v1850_v46  ;;  %v5133_v27 = vmax.f32 %v1801_v47, 0.0 }
 0x178   : > { %v1800_v32 = vadd.f32 %v3764_v14, %v4981_v33  ;;  %v5137_v13 = vmax.f32 %v1799_v56, 0.0 }
 0x179   : > { %5879 = vst [vmem:[#allocation18_spill] sm:$0xff] %v5133_v27  ;;  %v5135_v35 = vmax.f32 %v1802_v25, 0.0  ;;  %v5177_v25 = vld [vmem:[%s5682_s6] ss:$0 sm:$0xff] }
 0x17a   : > { %5881 = vst [vmem:[#allocation7_spill] sm:$0xff] %v5137_v13  ;;  %v5139_v63 = vmax.f32 %v1800_v32, 0.0  ;;  %v3687_v58 = vpop.f32.mrb[28].mxu0 }
 0x17b   : > { %5880 = vst [vmem:[#allocation19_spill] sm:$0xff] %v5135_v35  ;;  %v3765_v61 = vadd.f32 %v3687_v58, %v5064_v23  ;;  %v1721_v9 = vpop.f32.mrb[29].mxu0  ;;  %v1852_v48 = vpack.c.bf16 %v5135_v35, %v5133_v27 }
 0x17c   : > { %5882 = vst [vmem:[#allocation6_spill] sm:$0xff] %v5139_v63  ;;  %v3766_v12 = vadd.f32 %v1721_v9, %v5067_v16  ;;  %v3688_v2 = vpop.f32.mrb[30].mxu0  ;;  %v1851_v20 = vpack.c.bf16 %v5139_v63, %v5137_v13 }
 0x17d   : > { %v1805_v41 = vadd.f32 %v3765_v61, %v4981_v33  ;;  %v3767_v31 = vadd.f32 %v3688_v2, %v5073_v52  ;;  %v1724_v17 = vpop.f32.mrb[31].mxu0 }
 0x17e   : > { %v1803_v45 = vadd.f32 %v3766_v12, %v4981_v33  ;;  %v3768_v54 = vadd.f32 %v1724_v17, %v5079_v5  ;;  %3729 = vmatprep.mubr.bf16.mxu1 %v1851_v20 }
 0x17f   : > { %v1806_v23 = vadd.f32 %v3767_v31, %v4981_v33  ;;  %3730 = vmatmul.mubr.bf16.gmra.mrb[56].mxu1 %v1852_v48  ;;  %v5153_v16 = vmax.f32 %v1805_v41, 0.0 }
 0x180   : > { %v1804_v11 = vadd.f32 %v3768_v54, %v4981_v33  ;;  %v5157_v29 = vmax.f32 %v1803_v45, 0.0  ;;  %v5168_v33 = vld [vmem:[%s5681_s5] ss:$0 sm:$0xff] }
 0x181   : > { %5883 = vst [vmem:[#allocation9_spill] sm:$0xff] %v5153_v16  ;;  %v5155_v44 = vmax.f32 %v1806_v23, 0.0 }
 0x182   : > { %5885 = vst [vmem:[#allocation13_spill] sm:$0xff] %v5157_v29  ;;  %v5159_v55 = vmax.f32 %v1804_v11, 0.0 }
 0x183   : > { %5884 = vst [vmem:[#allocation8_spill] sm:$0xff] %v5155_v44  ;;  %v1854_v52 = vpack.c.bf16 %v5155_v44, %v5153_v16 }
 0x184   : > { %5886 = vst [vmem:[#allocation11_spill] sm:$0xff] %v5159_v55  ;;  %v1853_v5 = vpack.c.bf16 %v5159_v55, %v5157_v29 }
 0x186   : > { %3733 = vmatprep.mubr.bf16.mxu1 %v1853_v5 }
 0x187   : > { %3734 = vmatmul.mubr.bf16.gmra.mrb[60].mxu1 %v1854_v52 }
 0x222   : > { %v3707_v15 = vpop.f32.mrb[32].mxu1 }
 0x223   : > { %v1969_v42 = vadd.f32 %v3707_v15, %v5168_v33  ;;  %v1960_v3 = vpop.f32.mrb[33].mxu1 }
 0x224   : > { %v1961_v46 = vadd.f32 %v5168_v33, %v1960_v3  ;;  %v3708_v36 = vpop.f32.mrb[34].mxu1 }
 0x225   : > { %3906 = vtanh.f32 %v1969_v42  ;;  %v1963_v10 = vpop.f32.mrb[35].mxu1  ;;  %v1972_v22 = vadd.f32 %v3708_v36, %v5168_v33 }
 0x226   : > { %3908 = vtanh.f32 %v1961_v46  ;;  %v1964_v49 = vadd.f32 %v5168_v33, %v1963_v10 }
 0x227   : > { %3910 = vtanh.f32 %v1972_v22 }
 0x228   : > { %3912 = vtanh.f32 %v1964_v49 }
 0x22a   : > { %v3711_v47 = vpop.f32.mrb[36].mxu1 }
 0x22b   : > { %v1976_v0 = vpop.f32.mrb[37].mxu1  ;;  %v1985_v58 = vadd.f32 %v3711_v47, %v5168_v33 }
 0x22c   : > { %v3712_v56 = vpop.f32.mrb[38].mxu1  ;;  %v1977_v48 = vadd.f32 %v5168_v33, %v1976_v0 }
 0x22d   : > { %v1979_v14 = vpop.f32.mrb[39].mxu1  ;;  %3914 = vtanh.f32 %v1985_v58  ;;  %v1988_v23 = vadd.f32 %v3712_v56, %v5168_v33 }
 0x22e   : > { %v1980_v53 = vadd.f32 %v5168_v33, %v1979_v14 }
 0x22f   : > { %v3907_v32 = vpop.eup %3906 }
 0x230   : > { %v2128_v61 = vmul.f32 %v3907_v32, %v5177_v25  ;;  %v3909_v9 = vpop.eup %3908 }
 0x231   : > { %v2126_v17 = vmul.f32 %v3909_v9, %v5177_v25  ;;  %v3911_v45 = vpop.eup %3910 }
 0x232   : > { %2162 = vadd.xlane.f32.xlu0 %v2128_v61  ;;  %v3715_v12 = vpop.f32.mrb[40].mxu1  ;;  %v2129_v52 = vmul.f32 %v3911_v45, %v5177_v25  ;;  %v3913_v5 = vpop.eup %3912 }
 0x233   : > { %v2001_v2 = vadd.f32 %v3715_v12, %v5168_v33  ;;  %v1992_v20 = vpop.f32.mrb[41].mxu1  ;;  %v2127_v36 = vmul.f32 %v3913_v5, %v5177_v25 }
 0x234   : > { %v1993_v41 = vadd.f32 %v5168_v33, %v1992_v20  ;;  %v3716_v31 = vpop.f32.mrb[42].mxu1 }
 0x235   : > { %3916 = vtanh.f32 %v2001_v2  ;;  %v1995_v54 = vpop.f32.mrb[43].mxu1  ;;  %v2004_v11 = vadd.f32 %v3716_v31, %v5168_v33 }
 0x236   : > { %3918 = vtanh.f32 %v1977_v48  ;;  %2158 = vadd.xlane.f32.xlu0 %v2126_v17  ;;  %v1996_v42 = vadd.f32 %v5168_v33, %v1995_v54 }
 0x237   : > { %3920 = vtanh.f32 %v1993_v41  ;;  %v3915_v10 = vpop.eup %3914 }
 0x238   : > { %3922 = vtanh.f32 %v1988_v23  ;;  %v2132_v56 = vmul.f32 %v3915_v10, %v5177_v25 }
 0x239   : > { %3924 = vtanh.f32 %v2004_v11 }
 0x23a   : > { %2164 = vadd.xlane.f32.xlu0 %v2129_v52  ;;  %v3719_v15 = vpop.f32.mrb[44].mxu1  ;;  %3926 = vtanh.f32 %v1980_v53 }
 0x23b   : > { %v2008_v3 = vpop.f32.mrb[45].mxu1  ;;  %3928 = vtanh.f32 %v1996_v42  ;;  %v2017_v49 = vadd.f32 %v3719_v15, %v5168_v33 }
 0x23c   : > { %v3720_v46 = vpop.f32.mrb[46].mxu1  ;;  %v2009_v58 = vadd.f32 %v5168_v33, %v2008_v3 }
 0x23d   : > { %v2011_v22 = vpop.f32.mrb[47].mxu1  ;;  %3930 = vtanh.f32 %v2017_v49  ;;  %v2020_v54 = vadd.f32 %v3720_v46, %v5168_v33 }
 0x23e   : > { %2160 = vadd.xlane.f32.xlu0 %v2127_v36  ;;  %v2012_v15 = vadd.f32 %v5168_v33, %v2011_v22 }
 0x23f   : > { %v3917_v47 = vpop.eup %3916 }
 0x240   : > { %v3919_v0 = vpop.eup %3918  ;;  %v2136_v14 = vmul.f32 %v3917_v47, %v5177_v25 }
 0x241   : > { %v3921_v32 = vpop.eup %3920  ;;  %v2130_v41 = vmul.f32 %v3919_v0, %v5177_v25 }
 0x242   : > { %2170 = vadd.xlane.f32.xlu0 %v2132_v56  ;;  %2178 = vadd.xlane.f32.xlu1 %v2136_v14  ;;  %v3723_v61 = vpop.f32.mrb[48].mxu1  ;;  %v3923_v12 = vpop.eup %3922  ;;  %v2134_v31 = vmul.f32 %v3921_v32, %v5177_v25 }
 0x243   : > { %v2033_v9 = vadd.f32 %v3723_v61, %v5168_v33  ;;  %v2024_v48 = vpop.f32.mrb[49].mxu1  ;;  %v3925_v17 = vpop.eup %3924  ;;  %v2133_v52 = vmul.f32 %v3923_v12, %v5177_v25 }
 0x244   : > { %v2025_v2 = vadd.f32 %v5168_v33, %v2024_v48  ;;  %v3724_v20 = vpop.f32.mrb[50].mxu1  ;;  %v3927_v11 = vpop.eup %3926  ;;  %v2137_v5 = vmul.f32 %v3925_v17, %v5177_v25 }
 0x245   : > { %3932 = vtanh.f32 %v2033_v9  ;;  %v2027_v45 = vpop.f32.mrb[51].mxu1  ;;  %v2036_v23 = vadd.f32 %v3724_v20, %v5168_v33  ;;  %v3929_v53 = vpop.eup %3928  ;;  %v2131_v10 = vmul.f32 %v3927_v11, %v5177_v25 }
 0x246   : > { %3934 = vtanh.f32 %v2009_v58  ;;  %2166 = vadd.xlane.f32.xlu0 %v2130_v41  ;;  %2174 = vadd.xlane.f32.xlu1 %v2134_v31  ;;  %v2135_v47 = vmul.f32 %v3929_v53, %v5177_v25  ;;  %v2028_v56 = vadd.f32 %v5168_v33, %v2027_v45 }
 0x247   : > { %3936 = vtanh.f32 %v2025_v2  ;;  %v3931_v49 = vpop.eup %3930 }
 0x248   : > { %3938 = vtanh.f32 %v2020_v54  ;;  %v2140_v58 = vmul.f32 %v3931_v49, %v5177_v25 }
 0x249   : > { %3940 = vtanh.f32 %v2036_v23 }
 0x24a   : > { %2172 = vadd.xlane.f32.xlu0 %v2133_v52  ;;  %2180 = vadd.xlane.f32.xlu1 %v2137_v5  ;;  %v3727_v42 = vpop.f32.mrb[52].mxu1  ;;  %3942 = vtanh.f32 %v2012_v15 }
 0x24b   : > { %v2049_v3 = vadd.f32 %v3727_v42, %v5168_v33  ;;  %v2040_v46 = vpop.f32.mrb[53].mxu1 }
 0x24c   : > { %v3728_v36 = vpop.f32.mrb[54].mxu1  ;;  %v2041_v14 = vadd.f32 %v5168_v33, %v2040_v46 }
 0x24d   : > { %v2043_v0 = vpop.f32.mrb[55].mxu1  ;;  %3944 = vtanh.f32 %v2049_v3  ;;  %v2052_v48 = vadd.f32 %v3728_v36, %v5168_v33 }
 0x24e   : > { %2168 = vadd.xlane.f32.xlu0 %v2131_v10  ;;  %2176 = vadd.xlane.f32.xlu1 %v2135_v47  ;;  %3946 = vtanh.f32 %v2028_v56  ;;  %v2044_v23 = vadd.f32 %v5168_v33, %v2043_v0 }
 0x24f   : > { %v3933_v22 = vpop.eup %3932  ;;  %3948 = vtanh.f32 %v2041_v14 }
 0x250   : > { %v3935_v32 = vpop.eup %3934  ;;  %v2144_v61 = vmul.f32 %v3933_v22, %v5177_v25  ;;  %3950 = vtanh.f32 %v2052_v48 }
 0x251   : > { %v3937_v9 = vpop.eup %3936  ;;  %v2138_v17 = vmul.f32 %v3935_v32, %v5177_v25 }
 0x252   : > { %2186 = vadd.xlane.f32.xlu1 %v2140_v58  ;;  %2194 = vadd.xlane.f32.xlu0 %v2144_v61  ;;  %v3731_v12 = vpop.f32.mrb[56].mxu1  ;;  %v3939_v41 = vpop.eup %3938  ;;  %v2142_v45 = vmul.f32 %v3937_v9, %v5177_v25 }
 0x253   : > { %v2065_v2 = vadd.f32 %v3731_v12, %v5168_v33  ;;  %v2056_v20 = vpop.f32.mrb[57].mxu1  ;;  %v3941_v54 = vpop.eup %3940  ;;  %v2141_v42 = vmul.f32 %v3939_v41, %v5177_v25 }
 0x254   : > { %v3732_v31 = vpop.f32.mrb[58].mxu1  ;;  %v2057_v52 = vadd.f32 %v5168_v33, %v2056_v20  ;;  %v3943_v53 = vpop.eup %3942  ;;  %v2145_v3 = vmul.f32 %v3941_v54, %v5177_v25 }
 0x255   : > { %v2059_v11 = vpop.f32.mrb[59].mxu1  ;;  %3952 = vtanh.f32 %v2065_v2  ;;  %v2068_v5 = vadd.f32 %v3732_v31, %v5168_v33  ;;  %v2139_v22 = vmul.f32 %v3943_v53, %v5177_v25 }
 0x256   : > { %2182 = vadd.xlane.f32.xlu1 %v2138_v17  ;;  %2190 = vadd.xlane.f32.xlu0 %v2142_v45  ;;  %v2060_v15 = vadd.f32 %v5168_v33, %v2059_v11  ;;  %3954 = vtanh.f32 %v2044_v23 }
 0x257   : > { %v3945_v46 = vpop.eup %3944  ;;  %3956 = vtanh.f32 %v2057_v52 }
 0x258   : > { %3958 = vtanh.f32 %v2068_v5  ;;  %v3947_v49 = vpop.eup %3946  ;;  %v2148_v14 = vmul.f32 %v3945_v46, %v5177_v25 }
 0x259   : > { %3960 = vtanh.f32 %v2060_v15  ;;  %v3949_v32 = vpop.eup %3948  ;;  %v2143_v12 = vmul.f32 %v3947_v49, %v5177_v25  ;;  %v3432_v49 = vld [vmem:[#allocation2] ss:$0 sm:$0xff] }
 0x25a   : > { %2188 = vadd.xlane.f32.xlu1 %v2141_v42  ;;  %2196 = vadd.xlane.f32.xlu0 %v2145_v3  ;;  %v3735_v36 = vpop.f32.mrb[60].mxu1  ;;  %v3951_v48 = vpop.eup %3950  ;;  %v2146_v2 = vmul.f32 %v3949_v32, %v5177_v25 }
 0x25b   : > { %v2081_v10 = vadd.f32 %v3735_v36, %v5168_v33  ;;  %v2072_v47 = vpop.f32.mrb[61].mxu1  ;;  %v2149_v17 = vmul.f32 %v3951_v48, %v5177_v25 }
 0x25c   : > { %v2073_v0 = vadd.f32 %v5168_v33, %v2072_v47  ;;  %v3736_v56 = vpop.f32.mrb[62].mxu1 }
 0x25d   : > { %3962 = vtanh.f32 %v2081_v10  ;;  %v2084_v58 = vadd.f32 %v3736_v56, %v5168_v33  ;;  %v2075_v61 = vpop.f32.mrb[63].mxu1 }
 0x25e   : > { %3964 = vtanh.f32 %v2073_v0  ;;  %v2076_v9 = vadd.f32 %v5168_v33, %v2075_v61  ;;  %2184 = vadd.xlane.f32.xlu1 %v2139_v22  ;;  %2202 = vadd.xlane.f32.xlu0 %v2148_v14 }
 0x25f   : > { %3966 = vtanh.f32 %v2084_v58  ;;  %v3953_v20 = vpop.eup %3952 }
 0x260   : > { %3968 = vtanh.f32 %v2076_v9  ;;  %v3955_v41 = vpop.eup %3954  ;;  %v2152_v45 = vmul.f32 %v3953_v20, %v5177_v25 }
 0x261   : > { %v3957_v31 = vpop.eup %3956  ;;  %v2147_v52 = vmul.f32 %v3955_v41, %v5177_v25 }
 0x262   : > { %2192 = vadd.xlane.f32.xlu1 %v2143_v12  ;;  %2198 = vadd.xlane.f32.xlu0 %v2146_v2  ;;  %v3959_v54 = vpop.eup %3958  ;;  %v2150_v47 = vmul.f32 %v3957_v31, %v5177_v25 }
 0x263   : > { %v3961_v33 = vpop.eup %3960  ;;  %v2153_v5 = vmul.f32 %v3959_v54, %v5177_v25 }
 0x264   : > { %v2151_v10 = vmul.f32 %v3961_v33, %v5177_v25 }
 0x266   : > { %2204 = vadd.xlane.f32.xlu0 %v2149_v17  ;;  %2210 = vadd.xlane.f32.xlu1 %v2152_v45 }
 0x267   : > { %v3963_v23 = vpop.eup %3962 }
 0x268   : > { %v3965_v11 = vpop.eup %3964  ;;  %v2156_v53 = vmul.f32 %v3963_v23, %v5177_v25 }
 0x269   : > { %v3967_v15 = vpop.eup %3966  ;;  %v2154_v42 = vmul.f32 %v3965_v11, %v5177_v25 }
 0x26a   : > { %v3969_v3 = vpop.eup %3968  ;;  %2200 = vadd.xlane.f32.xlu0 %v2147_v52  ;;  %2212 = vadd.xlane.f32.xlu1 %v2153_v5  ;;  %v2157_v46 = vmul.f32 %v3967_v15, %v5177_v25 }
 0x26b   : > { %v2155_v36 = vmul.f32 %v3969_v3, %v5177_v25  ;;  %v2304_v3 = vlaneseq }
 0x26e   : > { %2208 = vadd.xlane.f32.xlu1 %v2151_v10  ;;  %2206 = vadd.xlane.f32.xlu0 %v2150_v47  ;;  %v5276_v10 = vshrl.u32 %v2304_v3, 7 }
 0x272   : > { %2218 = vadd.xlane.f32.xlu1 %v2156_v53 }
 0x276   : > { %2214 = vadd.xlane.f32.xlu1 %v2154_v42 }
 0x27a   : > { %2216 = vadd.xlane.f32.xlu1 %v2155_v36  ;;  %v2305_v36 = vand.u32 127, %v2304_v3 }
 0x27c   : > { %v5281_v44 = vsub.s32 %v2305_v36, %v5276_v10 }
 0x27e   : > { %2220 = vadd.xlane.f32.xlu1 %v2157_v46 }
 0x284   : > { %2229 = vperm.xlu0 %3843, %v3432_v49  }
 0x2bf   : > { %v2163_v0 = vpop.xlane.xlu0 %2162 }
 0x2c3   : > { %v2159_v56 = vpop.xlane.xlu0 %2158 }
 0x2c7   : > { %v2165_v22 = vpop.xlane.xlu0 %2164 }
 0x2cb   : > { %v2161_v14 = vpop.xlane.xlu0 %2160 }
 0x2cf   : > { %v5239_v32 = vpop.xlane.xlu0 %2170  ;;  %v5241_v58 = vpop.xlane.xlu1 %2178 }
 0x2d3   : > { %v2167_v61 = vpop.xlane.xlu0 %2166  ;;  %v5243_v9 = vpop.xlane.xlu1 %2174 }
 0x2d7   : > { %v5245_v25 = vpop.xlane.xlu0 %2172  ;;  %v5247_v48 = vpop.xlane.xlu1 %2180 }
 0x2db   : > { %v2169_v12 = vpop.xlane.xlu0 %2168  ;;  %v5249_v2 = vpop.xlane.xlu1 %2176 }
 0x2df   : > { %v5251_v20 = vpop.xlane.xlu1 %2186  ;;  %v5253_v41 = vpop.xlane.xlu0 %2194 }
 0x2e3   : > { %v5255_v31 = vpop.xlane.xlu1 %2182  ;;  %v5257_v17 = vpop.xlane.xlu0 %2190 }
 0x2e7   : > { %v5259_v45 = vpop.xlane.xlu1 %2188  ;;  %v5261_v54 = vpop.xlane.xlu0 %2196 }
 0x2eb   : > { %v5263_v33 = vpop.xlane.xlu1 %2184  ;;  %v5265_v23 = vpop.xlane.xlu0 %2202 }
 0x2ef   : > { %v5267_v11 = vpop.xlane.xlu1 %2192  ;;  %v5269_v52 = vpop.xlane.xlu0 %2198 }
 0x2f3   : > { %v5271_v5 = vpop.xlane.xlu0 %2204  ;;  %v2211_v53 = vpop.xlane.xlu1 %2210 }
 0x2f7   : > { %v2213_v15 = vpop.xlane.xlu1 %2212  ;;  %v5274_v42 = vpop.xlane.xlu0 %2200 }
 0x2fb   : > { %v2209_v46 = vpop.xlane.xlu1 %2208  ;;  %v2207_v47 = vpop.xlane.xlu0 %2206 }
 0x2ff   : > { %v5278_v49 = vpop.xlane.xlu1 %2218 }
 0x303   : > { %v5288_v55 = vpop.permute.xlu0 %2229  ;;  %v2215_v3 = vpop.xlane.xlu1 %2214 }
 0x304   : > { %v2256_v29 = vadd.f32 %v5288_v55, %v2207_v47  ;;  %v2257_v16 = vadd.f32 %v5288_v55, %v2209_v46  ;;  %v2258_v63 = vadd.f32 %v5288_v55, %v2211_v53  ;;  %v2259_v36 = vadd.f32 %v5288_v55, %v2213_v15 }
 0x305   : > { %v2232_v13 = vadd.f32 %v5288_v55, %v2159_v56  ;;  %v2233_v35 = vadd.f32 %v5288_v55, %v2161_v14  ;;  %v2234_v27 = vadd.f32 %v5288_v55, %v2163_v0  ;;  %v5302_v46 = vadd.f32 %v5288_v55, %v2215_v3 }
 0x306   : > { %v2405_v26 = vrot.slane %v2256_v29, %v5281_v44  ;;  %v2409_v30 = vrot.slane %v2257_v16, %v5281_v44  ;;  %v2413_v47 = vrot.slane %v2258_v63, %v5281_v44  ;;  %v2235_v15 = vadd.f32 %v5288_v55, %v2165_v22 }
 0x307   : > { %v2217_v53 = vpop.xlane.xlu1 %2216  ;;  %v2417_v56 = vrot.slane %v2259_v36, %v5281_v44  ;;  %v2236_v16 = vadd.f32 %v5288_v55, %v2167_v61  ;;  %v2309_v14 = vrot.slane %v2232_v13, %v5281_v44  ;;  %v2313_v3 = vrot.slane %v2233_v35, %v5281_v44 }
 0x308   : > { %v2462_v0 = vsel %vm2434_vm7, %v2409_v30, %v2405_v26  ;;  %v5308_v29 = vadd.f32 %v5288_v55, %v2217_v53  ;;  %v2317_v22 = vrot.slane %v2234_v27, %v5281_v44  ;;  %v2237_v60 = vadd.f32 %v5288_v55, %v2169_v12  ;;  %v2265_v27 = vld [vmem:[%s5286_s19 + $0x8] sm:$0xff] }
 0x309   : > { %v2463_v63 = vsel %vm2436_vm8, %v2413_v47, %v2462_v0  ;;  %v2238_v30 = vadd.f32 %v5288_v55, %v5239_v32  ;;  %v2239_v26 = vadd.f32 %v5288_v55, %v5245_v25  ;;  %v2421_v36 = vrot.slane %v5302_v46, %v5281_v44 }
 0x30a   : > { %v2464_v61 = vsel %vm2438_vm9, %v2417_v56, %v2463_v63  ;;  %v2425_v13 = vrot.slane %v5308_v29, %v5281_v44  ;;  %v2321_v35 = vrot.slane %v2235_v15, %v5281_v44  ;;  %v2325_v12 = vrot.slane %v2236_v16, %v5281_v44 }
 0x30b   : > { %v2435_v47 = vsel %vm2434_vm7, %v2313_v3, %v2309_v14  ;;  %v2240_v32 = vadd.f32 %v5288_v55, %v5243_v9  ;;  %v2241_v25 = vadd.f32 %v5288_v55, %v5249_v2  ;;  %v2221_v53 = vpop.xlane.xlu1 %2220  ;;  %v2242_v46 = vadd.f32 %v5288_v55, %v5241_v58 }
 0x30c   : > { %v2437_v56 = vsel %vm2436_vm8, %v2317_v22, %v2435_v47  ;;  %v2243_v15 = vadd.f32 %v5288_v55, %v5247_v48  ;;  %v2244_v0 = vadd.f32 %v5288_v55, %v5255_v31  ;;  %v2329_v16 = vrot.slane %v2237_v60, %v5281_v44 }
 0x30d   : > { %v2333_v63 = vrot.slane %v2238_v30, %v5281_v44  ;;  %v2337_v9 = vrot.slane %v2239_v26, %v5281_v44  ;;  %v2439_v2 = vsel %vm2438_vm9, %v2321_v35, %v2437_v56  ;;  %vm2269_vm0 = vcmp.eq.f32.partialorder %v2265_v27, 0.0 }
 0x30e   : > { %v2441_v14 = vsel %vm2440_vm10, %v2325_v12, %v2439_v2  ;;  %v2245_v58 = vadd.f32 %v5288_v55, %v5263_v33  ;;  %v2341_v3 = vrot.slane %v2240_v32, %v5281_v44  ;;  %v2345_v48 = vrot.slane %v2241_v25, %v5281_v44 }
 0x30f   : > { %v2263_v31 = vadd.f32 %v5288_v55, %v2221_v53  ;;  %v2443_v60 = vsel %vm2442_vm11, %v2329_v16, %v2441_v14  ;;  %v2246_v22 = vadd.f32 %v5288_v55, %v5251_v20  ;;  %v2349_v30 = vrot.slane %v2242_v46, %v5281_v44 }
 0x310   : > { %v2445_v26 = vsel %vm2444_vm12, %v2333_v63, %v2443_v60  ;;  %v2247_v35 = vadd.f32 %v5288_v55, %v5259_v45  ;;  %v2353_v33 = vrot.slane %v2243_v15, %v5281_v44  ;;  %v2357_v12 = vrot.slane %v2244_v0, %v5281_v44 }
 0x311   : > { %v2447_v47 = vsel %vm2446_vm13, %v2337_v9, %v2445_v26  ;;  %v2448_v32 = vsel %vm2434_vm7, %v2345_v48, %v2341_v3  ;;  %v2248_v25 = vadd.f32 %v5288_v55, %v5257_v17  ;;  %v2249_v20 = vadd.f32 %v5288_v55, %v5267_v11  ;;  %v2266_v26 = vld [vmem:[%s5286_s19 + $0x10] sm:$0xff] }
 0x312   : > { %v2473_v53 = vsel %vm2268_vm14, -1e+09, %v2447_v47  ;;  %v2361_v56 = vrot.slane %v2245_v58, %v5281_v44  ;;  %v2449_v45 = vsel %vm2436_vm8, %v2349_v30, %v2448_v32  ;;  %v2250_v46 = vadd.f32 %v5288_v55, %v5253_v41 }
 0x313   : > { %v2478_v15 = vsel %vm2477_vm15, %v2473_v53, -inf  ;;  %v2365_v0 = vrot.slane %v2246_v22, %v5281_v44  ;;  %v2450_v16 = vsel %vm2438_vm9, %v2353_v33, %v2449_v45  ;;  %v2251_v17 = vadd.f32 %v5288_v55, %v5261_v54 }
 0x314   : > { %2479 = vmax.xlane.f32.xlu1 %v2478_v15  ;;  %v2369_v19 = vrot.slane %v2247_v35, %v5281_v44  ;;  %v2451_v11 = vsel %vm2440_vm10, %v2357_v12, %v2450_v16  ;;  %v2252_v63 = vadd.f32 %v5288_v55, %v5269_v52  ;;  %v2373_v41 = vrot.slane %v2248_v25, %v5281_v44 }
 0x315   : > { %v2452_v9 = vsel %vm2442_vm11, %v2361_v56, %v2451_v11  ;;  %v2253_v2 = vadd.f32 %v5288_v55, %v5274_v42  ;;  %v2377_v14 = vrot.slane %v2249_v20, %v5281_v44  ;;  %v2381_v54 = vrot.slane %v2250_v46, %v5281_v44 }
 0x316   : > { %v2465_v58 = vsel %vm2440_vm10, %v2421_v36, %v2464_v61  ;;  %v2453_v3 = vsel %vm2444_vm12, %v2365_v0, %v2452_v9  ;;  %v2254_v48 = vadd.f32 %v5288_v55, %v5265_v23  ;;  %v2255_v52 = vadd.f32 %v5288_v55, %v5271_v5 }
 0x317   : > { %v2454_v60 = vsel %vm2446_vm13, %v2369_v19, %v2453_v3  ;;  %v2385_v22 = vrot.slane %v2251_v17, %v5281_v44  ;;  %v2455_v42 = vsel %vm2434_vm7, %v2377_v14, %v2373_v41  ;;  %v2262_v30 = vadd.f32 %v5288_v55, %v5278_v49 }
 0x318   : > { %v2433_v61 = vrot.slane %v2263_v31, %v5281_v44  ;;  %v2474_v36 = vsel %vm2269_vm0, -1e+09, %v2454_v60  ;;  %v2389_v23 = vrot.slane %v2252_v63, %v5281_v44  ;;  %v2456_v35 = vsel %vm2436_vm8, %v2381_v54, %v2455_v42  ;;  %v2267_v31 = vld [vmem:[%s5286_s19 + $0x18] sm:$0xff] }
 0x319   : > { %v2481_v5 = vsel %vm2477_vm15, %v2474_v36, -inf  ;;  %v2393_v33 = vrot.slane %v2253_v2, %v5281_v44  ;;  %v2457_v12 = vsel %vm2438_vm9, %v2385_v22, %v2456_v35  ;;  %v2466_v55 = vsel %vm2442_vm11, %v2425_v13, %v2465_v58 }
 0x31a   : > { %2482 = vmax.xlane.f32.xlu1 %v2481_v5  ;;  %v2397_v49 = vrot.slane %v2254_v48, %v5281_v44  ;;  %v2458_v27 = vsel %vm2440_vm10, %v2389_v23, %v2457_v12  ;;  %v2429_v47 = vrot.slane %v2262_v30, %v5281_v44  ;;  %vm2270_vm1 = vcmp.eq.f32.partialorder %v2266_v26, 0.0 }
 0x31b   : > { %v2401_v32 = vrot.slane %v2255_v52, %v5281_v44  ;;  %v2459_v25 = vsel %vm2442_vm11, %v2393_v33, %v2458_v27  ;;  %vm2271_vm2 = vcmp.eq.f32.partialorder %v2267_v31, 0.0  ;;  %v2531_v26 = vsub.s32 1, %v5276_v10 }
 0x31c   : > { %v2460_v20 = vsel %vm2444_vm12, %v2397_v49, %v2459_v25  ;;  %v2467_v56 = vsel %vm2444_vm12, %v2429_v47, %v2466_v55  ;;  %v5426_v23 = vsub.s32 0, %v5276_v10  ;;  %v2538_v55 = vsub.s32 2, %v5276_v10 }
 0x31d   : > { %v2461_v29 = vsel %vm2446_vm13, %v2401_v32, %v2460_v20  ;;  %v2468_v13 = vsel %vm2446_vm13, %v2433_v61, %v2467_v56  ;;  %v2545_v47 = vsub.s32 3, %v5276_v10  ;;  %v2552_v56 = vsub.s32 4, %v5276_v10 }
 0x31e   : > { %v2475_v45 = vsel %vm2270_vm1, -1e+09, %v2461_v29  ;;  %v2476_v15 = vsel %vm2271_vm2, -1e+09, %v2468_v13 }
 0x31f   : > { %v2484_v46 = vsel %vm2477_vm15, %v2475_v45, -inf  ;;  %v2487_v0 = vsel %vm2477_vm15, %v2476_v15, -inf }
 0x320   : > { %2485 = vmax.xlane.f32.xlu1 %v2484_v46 }
 0x324   : > { %2488 = vmax.xlane.f32.xlu1 %v2487_v0  ;;  %v2566_v0 = vsub.s32 6, %v5276_v10 }
 0x3a1   : > { %v2480_v44 = vpop.xlane.xlu1 %2479 }
 0x3a2   : > { %v2490_v16 = vsub.f32 %v2473_v53, %v2480_v44 }
 0x3a4   : > { %v2494_v17 = vmul.f32 1.442695, %v2490_v16 }
 0x3a6   : > { %3970 = vpow2.f32 %v2494_v17 }
 0x3a7   : > { %v2483_v19 = vpop.xlane.xlu1 %2482 }
 0x3a8   : > { %v2491_v11 = vsub.f32 %v2474_v36, %v2483_v19 }
 0x3aa   : > { %v2496_v63 = vmul.f32 1.442695, %v2491_v11 }
 0x3ac   : > { %3972 = vpow2.f32 %v2496_v63 }
 0x3ad   : > { %v2486_v41 = vpop.xlane.xlu1 %2485 }
 0x3ae   : > { %v2492_v9 = vsub.f32 %v2475_v45, %v2486_v41  ;;  %v2559_v45 = vsub.s32 5, %v5276_v10 }
 0x3b0   : > { %v3971_v2 = vpop.eup %3970  ;;  %v2498_v14 = vmul.f32 1.442695, %v2492_v9 }
 0x3b1   : > { %v2489_v54 = vpop.xlane.xlu1 %2488  ;;  %v2502_v58 = vsel %vm2477_vm15, %v3971_v2, 0.0 }
 0x3b2   : > { %3974 = vpow2.f32 %v2498_v14  ;;  %v2493_v3 = vsub.f32 %v2476_v15, %v2489_v54  ;;  %2503 = vadd.xlane.f32.xlu1 %v2502_v58  ;;  %v2573_v58 = vsub.s32 7, %v5276_v10 }
 0x3b4   : > { %v2500_v48 = vmul.f32 1.442695, %v2493_v3 }
 0x3b6   : > { %v3973_v52 = vpop.eup %3972  ;;  %3976 = vpow2.f32 %v2500_v48 }
 0x3b7   : > { %v2505_v53 = vsel %vm2477_vm15, %v3973_v52, 0.0 }
 0x3b8   : > { %2506 = vadd.xlane.f32.xlu1 %v2505_v53 }
 0x3bc   : > { %v3975_v60 = vpop.eup %3974 }
 0x3bd   : > { %v2508_v22 = vsel %vm2477_vm15, %v3975_v60, 0.0 }
 0x3be   : > { %2509 = vadd.xlane.f32.xlu1 %v2508_v22 }
 0x3c0   : > { %v3977_v42 = vpop.eup %3976 }
 0x3c1   : > { %v2511_v30 = vsel %vm2477_vm15, %v3977_v42, 0.0 }
 0x3c2   : > { %2512 = vadd.xlane.f32.xlu1 %v2511_v30 }
 0x43f   : > { %v2504_v61 = vpop.xlane.xlu1 %2503 }
 0x440   : > { %3978 = vrcp.f32 %v2504_v61 }
 0x445   : > { %v2507_v36 = vpop.xlane.xlu1 %2506 }
 0x446   : > { %3980 = vrcp.f32 %v2507_v36 }
 0x44a   : > { %v3979_v35 = vpop.eup %3978 }
 0x44b   : > { %v5428_v5 = vmul.f32 %v3979_v35, %v3971_v2  ;;  %v2510_v25 = vpop.xlane.xlu1 %2509 }
 0x44c   : > { %3982 = vrcp.f32 %v2510_v25  ;;  %v3480_v25 = vpack.c.bf16 %v5041_v4, %v5041_v4  ;;  %v3484_v4 = vpack.c.bf16 %v5069_v7, %v5069_v7 }
 0x44d   : > { %v2532_v33 = vrot.slane %v5428_v5, %v2531_v26  ;;  %v2525_v12 = vrot.slane %v5428_v5, %v5426_v23  ;;  %v2539_v31 = vrot.slane %v5428_v5, %v2538_v55  ;;  %v2546_v20 = vrot.slane %v5428_v5, %v2545_v47 }
 0x44e   : > { %v2553_v13 = vrot.slane %v5428_v5, %v2552_v56  ;;  %v2560_v15 = vrot.slane %v5428_v5, %v2559_v45  ;;  %v2567_v17 = vrot.slane %v5428_v5, %v2566_v0 }
 0x44f   : > { %2534 = vbcast.lane.b32.xlu0 %v2532_v33, 256  ;;  %2527 = vbcast.lane.b32.xlu1 %v2525_v12, 256  ;;  %v2513_v44 = vpop.xlane.xlu1 %2512 }
 0x450   : > { %v3981_v49 = vpop.eup %3980  ;;  %3984 = vrcp.f32 %v2513_v44 }
 0x451   : > { %v2519_v27 = vmul.f32 %v3981_v49, %v3973_v52 }
 0x453   : > { %2541 = vbcast.lane.b32.xlu0 %v2539_v31, 256  ;;  %v2588_v32 = vrot.slane %v2519_v27, %v2531_v26  ;;  %v2595_v29 = vrot.slane %v2519_v27, %v2538_v55  ;;  %v2602_v46 = vrot.slane %v2519_v27, %v2545_v47  ;;  %v2609_v16 = vrot.slane %v2519_v27, %v2552_v56 }
 0x454   : > { %v2616_v11 = vrot.slane %v2519_v27, %v2559_v45  ;;  %v2581_v41 = vrot.slane %v2519_v27, %v5426_v23  ;;  %v2623_v9 = vrot.slane %v2519_v27, %v2566_v0  ;;  %v2630_v52 = vrot.slane %v2519_v27, %v2573_v58 }
 0x455   : > { %2590 = vbcast.lane.b32.xlu1 %v2588_v32, 256  ;;  %v3470_v27 = vpack.c.bf16 %v4999_v18, %v4999_v18  ;;  %v3472_v31 = vpack.c.bf16 %v4993_v8, %v4993_v8  ;;  %v3476_v32 = vpack.c.bf16 %v5017_v28, %v5017_v28  ;;  %v3475_v18 = vpack.c.bf16 %v5025_v39, %v5025_v39 }
 0x456   : > { %v3983_v19 = vpop.eup %3982  ;;  %v3478_v8 = vpack.c.bf16 %v5047_v1, %v5047_v1  ;;  %v3479_v28 = vpack.c.bf16 %v5049_v43, %v5049_v43  ;;  %v3482_v1 = vpack.c.bf16 %v5075_v51, %v5075_v51  ;;  %v3483_v51 = vpack.c.bf16 %v5077_v24, %v5077_v24 }
 0x457   : > { %2548 = vbcast.lane.b32.xlu0 %v2546_v20, 256  ;;  %v2520_v63 = vmul.f32 %v3983_v19, %v3975_v60  ;;  %v2858_v20 = vunpack.c.l.bf16 %v3470_v27  ;;  %v5490_v19 = vunpack.c.l.bf16 %v3484_v4  ;;  %v3489_v24 = vpack.c.bf16 %v5095_v6, %v5095_v6  ;;  %v5890_v6 = vld [vmem:[#allocation12_spill] sm:$0xff] }
 0x458   : > { %v5484_v43 = vunpack.c.l.bf16 %v3478_v8  ;;  %v5891_v8 = vld [vmem:[#allocation18_spill] sm:$0xff] }
 0x459   : > { %2597 = vbcast.lane.b32.xlu1 %v2595_v29, 256  ;;  %v2637_v2 = vrot.slane %v2520_v63, %v5426_v23  ;;  %v2644_v14 = vrot.slane %v2520_v63, %v2531_v26  ;;  %v2651_v3 = vrot.slane %v2520_v63, %v2538_v55  ;;  %v2658_v53 = vrot.slane %v2520_v63, %v2545_v47 }
 0x45a   : > { %v3985_v54 = vpop.eup %3984  ;;  %v2665_v22 = vrot.slane %v2520_v63, %v2552_v56  ;;  %v2672_v61 = vrot.slane %v2520_v63, %v2559_v45  ;;  %v2679_v35 = vrot.slane %v2520_v63, %v2566_v0 }
 0x45b   : > { %2555 = vbcast.lane.b32.xlu0 %v2553_v13, 256  ;;  %v2521_v48 = vmul.f32 %v3985_v54, %v3977_v42  ;;  %v5478_v13 = vunpack.c.l.bf16 %v3476_v32  ;;  %v3487_v54 = vpack.c.bf16 %v5099_v40, %v5099_v40  ;;  %v5889_v40 = vld [vmem:[#allocation17_spill] sm:$0xff] }
 0x45d   : > { %2604 = vbcast.lane.b32.xlu1 %v2602_v46, 256  ;;  %v2700_v60 = vrot.slane %v2521_v48, %v2531_v26  ;;  %v2707_v30 = vrot.slane %v2521_v48, %v2538_v55  ;;  %v2714_v36 = vrot.slane %v2521_v48, %v2545_v47  ;;  %v2721_v10 = vrot.slane %v2521_v48, %v2552_v56 }
 0x45e   : > { %v2693_v42 = vrot.slane %v2521_v48, %v5426_v23  ;;  %v2728_v33 = vrot.slane %v2521_v48, %v2559_v45  ;;  %v2574_v26 = vrot.slane %v5428_v5, %v2573_v58  ;;  %v2735_v12 = vrot.slane %v2521_v48, %v2566_v0 }
 0x45f   : > { %2562 = vbcast.lane.b32.xlu0 %v2560_v15, 256  ;;  %v2686_v55 = vrot.slane %v2520_v63, %v2573_v58  ;;  %v2742_v49 = vrot.slane %v2521_v48, %v2573_v58  ;;  %v3471_v23 = vpack.c.bf16 %v5001_v37, %v5001_v37  ;;  %v3473_v47 = vpack.c.bf16 %v4995_v59, %v4995_v59  ;;  %v5887_v58 = vld [vmem:[#allocation16_spill] sm:$0xff] }
 0x460   : > { %v3474_v5 = vpack.c.bf16 %v5023_v34, %v5023_v34  ;;  %v3477_v37 = vpack.c.bf16 %v5019_v62, %v5019_v62  ;;  %v2860_v59 = vunpack.c.l.bf16 %v3472_v31  ;;  %v3481_v34 = vpack.c.bf16 %v5043_v38, %v5043_v38 }
 0x461   : > { %2611 = vbcast.lane.b32.xlu1 %v2609_v16, 256  ;;  %v2859_v56 = vunpack.c.l.bf16 %v3471_v23  ;;  %v2861_v29 = vunpack.c.l.bf16 %v3473_v47  ;;  %v3485_v62 = vpack.c.bf16 %v5071_v21, %v5071_v21  ;;  %v2868_v46 = vunpack.c.l.bf16 %v3480_v25 }
 0x462   : > { %v5474_v39 = vunpack.c.l.bf16 %v3474_v5  ;;  %v5482_v15 = vunpack.c.l.bf16 %v3475_v18  ;;  %v5486_v0 = vunpack.c.l.bf16 %v3477_v37  ;;  %v2869_v16 = vunpack.c.l.bf16 %v3481_v34 }
 0x463   : > { %2569 = vbcast.lane.b32.xlu0 %v2567_v17, 256  ;;  %v2867_v17 = vunpack.c.l.bf16 %v3479_v28  ;;  %v3486_v21 = vpack.c.bf16 %v5097_v57, %v5097_v57  ;;  %v5888_v57 = vld [vmem:[#allocation10_spill] sm:$0xff]  ;;  %v3496_v37 = vpack.c.bf16 %v5891_v8, %v5891_v8 }
 0x464   : > { %v3492_v48 = vpack.c.bf16 %v5888_v57, %v5888_v57 }
 0x465   : > { %2618 = vbcast.lane.b32.xlu1 %v2616_v11, 256  ;;  %v3488_v11 = vpack.c.bf16 %v5093_v50, %v5093_v50 }
 0x466   : > { %v5524_v31 = vunpack.c.l.bf16 %v3492_v48  ;;  %v5540_v48 = vunpack.c.l.bf16 %v3496_v37  ;;  %v5895_v37 = vld [vmem:[#allocation9_spill] sm:$0xff] }
 0x467   : > { %2583 = vbcast.lane.b32.xlu0 %v2581_v41, 256 }
 0x469   : > { %2625 = vbcast.lane.b32.xlu1 %v2623_v9, 256  ;;  %v5496_v9 = vunpack.c.l.bf16 %v3482_v1 }
 0x46b   : > { %2639 = vbcast.lane.b32.xlu0 %v2637_v2, 256  ;;  %v5498_v2 = vunpack.c.l.bf16 %v3485_v62 }
 0x46d   : > { %2646 = vbcast.lane.b32.xlu1 %v2644_v14, 256 }
 0x46f   : > { %2653 = vbcast.lane.b32.xlu0 %v2651_v3, 256  ;;  %v3490_v3 = vpack.c.bf16 %v5887_v58, %v5887_v58 }
 0x471   : > { %2632 = vbcast.lane.b32.xlu1 %v2630_v52, 256  ;;  %v5522_v27 = vunpack.c.l.bf16 %v3490_v3 }
 0x473   : > { %2660 = vbcast.lane.b32.xlu0 %v2658_v53, 256 }
 0x475   : > { %2702 = vbcast.lane.b32.xlu1 %v2700_v60, 256  ;;  %v5508_v60 = vunpack.c.l.bf16 %v3483_v51 }
 0x477   : > { %2667 = vbcast.lane.b32.xlu0 %v2665_v22, 256 }
 0x479   : > { %2709 = vbcast.lane.b32.xlu1 %v2707_v30, 256  ;;  %v5510_v30 = vunpack.c.l.bf16 %v3486_v21 }
 0x47b   : > { %2674 = vbcast.lane.b32.xlu0 %v2672_v61, 256  ;;  %v5512_v61 = vunpack.c.l.bf16 %v3488_v11 }
 0x47d   : > { %2716 = vbcast.lane.b32.xlu1 %v2714_v36, 256  ;;  %v3491_v36 = vpack.c.bf16 %v5889_v40, %v5889_v40 }
 0x47f   : > { %2681 = vbcast.lane.b32.xlu0 %v2679_v35, 256  ;;  %v3493_v35 = vpack.c.bf16 %v5890_v6, %v5890_v6 }
 0x481   : > { %2723 = vbcast.lane.b32.xlu1 %v2721_v10, 256 }
 0x483   : > { %2695 = vbcast.lane.b32.xlu0 %v2693_v42, 256 }
 0x485   : > { %2730 = vbcast.lane.b32.xlu1 %v2728_v33, 256 }
 0x487   : > { %2576 = vbcast.lane.b32.xlu0 %v2574_v26, 256 }
 0x489   : > { %2737 = vbcast.lane.b32.xlu1 %v2735_v12, 256 }
 0x48b   : > { %2688 = vbcast.lane.b32.xlu0 %v2686_v55, 256  ;;  %v5518_v55 = vunpack.c.l.bf16 %v3487_v54 }
 0x48d   : > { %2744 = vbcast.lane.b32.xlu1 %v2742_v49, 256  ;;  %v5520_v49 = vunpack.c.l.bf16 %v3489_v24  ;;  %v5894_v24 = vld [vmem:[#allocation6_spill] sm:$0xff] }
 0x48e   : > { %v3495_v58 = vpack.c.bf16 %v5894_v24, %v5894_v24 }
 0x4c1   : > { %v2535_v45 = vpop.permute.xlu0 %2534  ;;  %v2528_v38 = vpop.permute.xlu1 %2527 }
 0x4c2   : > { %v2891_v7 = vmul.f32 %v2859_v56, %v2535_v45  ;;  %v2890_v44 = vmul.f32 %v2858_v20, %v2528_v38  ;;  %v5528_v20 = vunpack.c.l.bf16 %v3491_v36  ;;  %v5892_v38 = vld [vmem:[#allocation19_spill] sm:$0xff] }
 0x4c4   : > { %v2928_v63 = vrot.slane %v2891_v7, 4  ;;  %v2922_v41 = vrot.slane %v2890_v44, 4 }
 0x4c5   : > { %v2542_v14 = vpop.permute.xlu0 %2541 }
 0x4c6   : > { %v2929_v50 = vadd.f32 %v2928_v63, %v2891_v7  ;;  %v2923_v52 = vadd.f32 %v2922_v41, %v2890_v44  ;;  %v2892_v53 = vmul.f32 %v2860_v59, %v2542_v14  ;;  %v5530_v59 = vunpack.c.l.bf16 %v3493_v35  ;;  %v5893_v44 = vld [vmem:[#allocation7_spill] sm:$0xff] }
 0x4c7   : > { %v2591_v22 = vpop.permute.xlu1 %2590  ;;  %v3497_v7 = vpack.c.bf16 %v5892_v38, %v5892_v38 }
 0x4c8   : > { %v2930_v10 = vrot.slane %v2929_v50, 2  ;;  %v2924_v42 = vrot.slane %v2923_v52, 2  ;;  %v2934_v33 = vrot.slane %v2892_v53, 4  ;;  %v2899_v26 = vmul.f32 %v2867_v17, %v2591_v22 }
 0x4c9   : > { %v2549_v12 = vpop.permute.xlu0 %2548 }
 0x4ca   : > { %v2931_v23 = vadd.f32 %v2930_v10, %v2929_v50  ;;  %v2925_v47 = vadd.f32 %v2924_v42, %v2923_v52  ;;  %v2935_v5 = vadd.f32 %v2934_v33, %v2892_v53  ;;  %v2976_v32 = vrot.slane %v2899_v26, 4 }
 0x4cb   : > { %v2893_v25 = vmul.f32 %v2861_v29, %v2549_v12  ;;  %v2598_v18 = vpop.permute.xlu1 %2597  ;;  %v3494_v29 = vpack.c.bf16 %v5893_v44, %v5893_v44  ;;  %v5547_v12 = vunpack.c.l.bf16 %v3497_v7 }
 0x4cc   : > { %v2932_v34 = vrot.slane %v2931_v23, 1  ;;  %v2926_v56 = vrot.slane %v2925_v47, 1  ;;  %v2936_v28 = vrot.slane %v2935_v5, 2  ;;  %v2977_v4 = vadd.f32 %v2976_v32, %v2899_v26 }
 0x4cd   : > { %v2940_v1 = vrot.slane %v2893_v25, 4  ;;  %v2900_v62 = vmul.f32 %v2868_v46, %v2598_v18  ;;  %v2556_v45 = vpop.permute.xlu0 %2555  ;;  %v5542_v40 = vunpack.c.l.bf16 %v3494_v29  ;;  %v5545_v26 = vunpack.c.l.bf16 %v3495_v58 }
 0x4ce   : > { %v2933_v51 = vadd.f32 %v2932_v34, %v2931_v23  ;;  %v2927_v17 = vadd.f32 %v2926_v56, %v2925_v47  ;;  %v2937_v21 = vadd.f32 %v2936_v28, %v2935_v5  ;;  %v2978_v11 = vrot.slane %v2977_v4, 2 }
 0x4cf   : > { %v2941_v63 = vadd.f32 %v2940_v1, %v2893_v25  ;;  %v2982_v41 = vrot.slane %v2900_v62, 4  ;;  %v2894_v14 = vmul.f32 %v5474_v39, %v2556_v45  ;;  %v2605_v54 = vpop.permute.xlu1 %2604 }
 0x4d0   : > { %v3146_v46 = vsel %vm2434_vm7, %v2933_v51, %v2927_v17  ;;  %v2938_v3 = vrot.slane %v2937_v21, 1  ;;  %v2901_v57 = vmul.f32 %v2869_v16, %v2605_v54  ;;  %v2979_v6 = vadd.f32 %v2978_v11, %v2977_v4  ;;  %v5896_v4 = vld [vmem:[#allocation13_spill] sm:$0xff] }
 0x4d1   : > { %v2942_v50 = vrot.slane %v2941_v63, 2  ;;  %v2983_v52 = vadd.f32 %v2982_v41, %v2900_v62  ;;  %v2946_v53 = vrot.slane %v2894_v14, 4  ;;  %v2563_v22 = vpop.permute.xlu0 %2562  ;;  %v3498_v1 = vpack.c.bf16 %v5896_v4, %v5896_v4 }
 0x4d2   : > { %v2939_v36 = vadd.f32 %v2938_v3, %v2937_v21  ;;  %v2988_v35 = vrot.slane %v2901_v57, 4  ;;  %v2895_v39 = vmul.f32 %v5482_v15, %v2563_v22  ;;  %v3500_v15 = vpack.c.bf16 %v5895_v37, %v5895_v37 }
 0x4d3   : > { %v2943_v10 = vadd.f32 %v2942_v50, %v2941_v63  ;;  %v2947_v42 = vadd.f32 %v2946_v53, %v2894_v14  ;;  %v2612_v33 = vpop.permute.xlu1 %2611  ;;  %v2984_v23 = vrot.slane %v2983_v52, 2  ;;  %v2980_v34 = vrot.slane %v2979_v6, 1 }
 0x4d4   : > { %v3147_v16 = vsel %vm2436_vm8, %v2939_v36, %v3146_v46  ;;  %v2989_v47 = vadd.f32 %v2988_v35, %v2901_v57  ;;  %v2952_v5 = vrot.slane %v2895_v39, 4  ;;  %v2902_v18 = vmul.f32 %v5496_v9, %v2612_v33 }
 0x4d5   : > { %v2944_v32 = vrot.slane %v2943_v10, 1  ;;  %v2948_v25 = vrot.slane %v2947_v42, 2  ;;  %v2570_v8 = vpop.permute.xlu0 %2569  ;;  %v2985_v29 = vadd.f32 %v2984_v23, %v2983_v52  ;;  %v5558_v14 = vunpack.c.l.bf16 %v3500_v15 }
 0x4d6   : > { %v2953_v56 = vadd.f32 %v2952_v5, %v2895_v39  ;;  %v2896_v28 = vmul.f32 %v5478_v13, %v2570_v8  ;;  %v2990_v38 = vrot.slane %v2989_v47, 2  ;;  %v2994_v7 = vrot.slane %v2902_v18, 4 }
 0x4d7   : > { %v2945_v62 = vadd.f32 %v2944_v32, %v2943_v10  ;;  %v2949_v45 = vadd.f32 %v2948_v25, %v2947_v42  ;;  %v2619_v44 = vpop.permute.xlu1 %2618  ;;  %v5560_v13 = vadd.f32 %v2980_v34, %v2979_v6  ;;  %v2986_v53 = vrot.slane %v2985_v29, 1 }
 0x4d8   : > { %v2954_v51 = vrot.slane %v2953_v56, 2  ;;  %v2958_v17 = vrot.slane %v2896_v28, 4  ;;  %v2903_v9 = vmul.f32 %v5508_v60, %v2619_v44  ;;  %v2995_v63 = vadd.f32 %v2994_v7, %v2902_v18 }
 0x4d9   : > { %v3148_v21 = vsel %vm2438_vm9, %v2945_v62, %v3147_v16  ;;  %v2950_v11 = vrot.slane %v2949_v45, 1  ;;  %v2584_v41 = vpop.permute.xlu0 %2583  ;;  %v2991_v3 = vadd.f32 %v2990_v38, %v2989_v47 }
 0x4da   : > { %v2955_v54 = vadd.f32 %v2954_v51, %v2953_v56  ;;  %v2959_v24 = vadd.f32 %v2958_v17, %v2896_v28  ;;  %v3000_v58 = vrot.slane %v2903_v9, 4  ;;  %v2996_v57 = vrot.slane %v2995_v63, 2 }
 0x4db   : > { %v2951_v46 = vadd.f32 %v2950_v11, %v2949_v45  ;;  %v2898_v50 = vmul.f32 %v5484_v43, %v2584_v41  ;;  %v2626_v52 = vpop.permute.xlu1 %2625  ;;  %v2992_v5 = vrot.slane %v2991_v3, 1  ;;  %v2987_v56 = vadd.f32 %v2986_v53, %v2985_v29 }
 0x4dc   : > { %v2956_v60 = vrot.slane %v2955_v54, 1  ;;  %v2960_v22 = vrot.slane %v2959_v24, 2  ;;  %v3001_v36 = vadd.f32 %v3000_v58, %v2903_v9  ;;  %v2997_v39 = vadd.f32 %v2996_v57, %v2995_v63 }
 0x4dd   : > { %v3149_v35 = vsel %vm2440_vm10, %v2951_v46, %v3148_v21  ;;  %v2970_v10 = vrot.slane %v2898_v50, 4  ;;  %v2904_v6 = vmul.f32 %v5490_v19, %v2626_v52  ;;  %v2640_v42 = vpop.permute.xlu0 %2639  ;;  %v2993_v51 = vadd.f32 %v2992_v5, %v2991_v3 }
 0x4de   : > { %v2957_v33 = vadd.f32 %v2956_v60, %v2955_v54  ;;  %v2961_v16 = vadd.f32 %v2960_v22, %v2959_v24  ;;  %v3002_v23 = vrot.slane %v3001_v36, 2  ;;  %v2906_v47 = vmul.f32 %v5510_v30, %v2640_v42 }
 0x4df   : > { %v2998_v32 = vrot.slane %v2997_v39, 1  ;;  %v2971_v43 = vadd.f32 %v2970_v10, %v2898_v50  ;;  %v3006_v25 = vrot.slane %v2904_v6, 4  ;;  %v2647_v18 = vpop.permute.xlu1 %2646 }
 0x4e0   : > { %v3150_v8 = vsel %vm2442_vm11, %v2957_v33, %v3149_v35  ;;  %v2962_v37 = vrot.slane %v2961_v16, 1  ;;  %v3003_v15 = vadd.f32 %v3002_v23, %v3001_v36  ;;  %v3018_v34 = vrot.slane %v2906_v47, 4 }
 0x4e1   : > { %v2972_v28 = vrot.slane %v2971_v43, 2  ;;  %v3007_v62 = vadd.f32 %v3006_v25, %v2904_v6  ;;  %v2907_v19 = vmul.f32 %v5518_v55, %v2647_v18  ;;  %v2654_v45 = vpop.permute.xlu0 %2653  ;;  %v2999_v63 = vadd.f32 %v2998_v32, %v2997_v39 }
 0x4e2   : > { %v2963_v38 = vadd.f32 %v2962_v37, %v2961_v16  ;;  %v3004_v7 = vrot.slane %v3003_v15, 1  ;;  %v3019_v44 = vadd.f32 %v3018_v34, %v2906_v47  ;;  %v2908_v30 = vmul.f32 %v5512_v61, %v2654_v45 }
 0x4e3   : > { %v2973_v17 = vadd.f32 %v2972_v28, %v2971_v43  ;;  %v3008_v9 = vrot.slane %v3007_v62, 2  ;;  %v3024_v21 = vrot.slane %v2907_v19, 4  ;;  %v2633_v11 = vpop.permute.xlu1 %2632 }
 0x4e4   : > { %v5570_v41 = vsel %vm2444_vm12, %v2963_v38, %v3150_v8  ;;  %v3020_v29 = vrot.slane %v3019_v44, 2  ;;  %v3030_v54 = vrot.slane %v2908_v30, 4  ;;  %v2905_v46 = vmul.f32 %v5498_v2, %v2633_v11 }
 0x4e5   : > { %v2974_v24 = vrot.slane %v2973_v17, 1  ;;  %v3009_v58 = vadd.f32 %v3008_v9, %v3007_v62  ;;  %v3025_v55 = vadd.f32 %v3024_v21, %v2907_v19  ;;  %v2661_v57 = vpop.permute.xlu0 %2660  ;;  %v3005_v50 = vadd.f32 %v3004_v7, %v3003_v15 }
 0x4e6   : > { %v3021_v52 = vadd.f32 %v3020_v29, %v3019_v44  ;;  %v3031_v61 = vadd.f32 %v3030_v54, %v2908_v30  ;;  %v2909_v3 = vmul.f32 %v5520_v49, %v2661_v57  ;;  %v3012_v36 = vrot.slane %v2905_v46, 4 }
 0x4e7   : > { %v2975_v53 = vadd.f32 %v2974_v24, %v2973_v17  ;;  %v3010_v60 = vrot.slane %v3009_v58, 1  ;;  %v3026_v22 = vrot.slane %v3025_v55, 2  ;;  %v2703_v35 = vpop.permute.xlu1 %2702  ;;  %v2886_v38 = vunpack.c.l.bf16 %v3498_v1 }
 0x4e8   : > { %v3022_v39 = vrot.slane %v3021_v52, 1  ;;  %v3032_v10 = vrot.slane %v3031_v61, 2  ;;  %v3036_v6 = vrot.slane %v2909_v3, 4  ;;  %v2915_v42 = vmul.f32 %v5545_v26, %v2703_v35 }
 0x4e9   : > { %v3153_v2 = vsel %vm2434_vm7, %v5560_v13, %v2975_v53  ;;  %v3011_v33 = vadd.f32 %v3010_v60, %v3009_v58  ;;  %v3027_v16 = vadd.f32 %v3026_v22, %v3025_v55  ;;  %v3013_v23 = vadd.f32 %v3012_v36, %v2905_v46  ;;  %v2668_v47 = vpop.permute.xlu0 %2667  ;;  %v5897_v46 = vld [vmem:[#allocation11_spill] sm:$0xff] }
 0x4ea   : > { %v3154_v49 = vsel %vm2436_vm8, %v2987_v56, %v3153_v2  ;;  %v3023_v5 = vadd.f32 %v3022_v39, %v3021_v52  ;;  %v3033_v32 = vadd.f32 %v3032_v10, %v3031_v61  ;;  %v3037_v43 = vadd.f32 %v3036_v6, %v2909_v3 }
 0x4eb   : > { %v3155_v25 = vsel %vm2438_vm9, %v2993_v51, %v3154_v49  ;;  %v3028_v18 = vrot.slane %v3027_v16, 1  ;;  %v3014_v8 = vrot.slane %v3013_v23, 2  ;;  %v3072_v37 = vrot.slane %v2915_v42, 4  ;;  %v2710_v26 = vpop.permute.xlu1 %2709 }
 0x4ec   : > { %v3156_v15 = vsel %vm2440_vm10, %v2999_v63, %v3155_v25  ;;  %v3034_v13 = vrot.slane %v3033_v32, 1  ;;  %v3038_v34 = vrot.slane %v3037_v43, 2  ;;  %v2910_v28 = vmul.f32 %v5522_v27, %v2668_v47 }
 0x4ed   : > { %v3157_v62 = vsel %vm2442_vm11, %v3005_v50, %v3156_v15  ;;  %v3029_v56 = vadd.f32 %v3028_v18, %v3027_v16  ;;  %v3015_v19 = vadd.f32 %v3014_v8, %v3013_v23  ;;  %v2675_v45 = vpop.permute.xlu0 %2674  ;;  %v3073_v27 = vadd.f32 %v3072_v37, %v2915_v42 }
 0x4ee   : > { %v3158_v7 = vsel %vm2444_vm12, %v3011_v33, %v3157_v62  ;;  %v3035_v44 = vadd.f32 %v3034_v13, %v3033_v32  ;;  %v3039_v30 = vadd.f32 %v3038_v34, %v3037_v43  ;;  %v3042_v51 = vrot.slane %v2910_v28, 4 }
 0x4ef   : > { %v3160_v17 = vsel %vm2434_vm7, %v3029_v56, %v3023_v5  ;;  %v3016_v9 = vrot.slane %v3015_v19, 1  ;;  %v2916_v21 = vmul.f32 %v5540_v48, %v2710_v26  ;;  %v2717_v11 = vpop.permute.xlu1 %2716  ;;  %v2911_v4 = vmul.f32 %v5528_v20, %v2675_v45 }
 0x4f0   : > { %v3161_v63 = vsel %vm2436_vm8, %v3035_v44, %v3160_v17  ;;  %v3040_v29 = vrot.slane %v3039_v30, 1  ;;  %v3043_v54 = vadd.f32 %v3042_v51, %v2910_v28  ;;  %v2917_v58 = vmul.f32 %v5547_v12, %v2717_v11 }
 0x4f1   : > { %v3017_v1 = vadd.f32 %v3016_v9, %v3015_v19  ;;  %v3078_v24 = vrot.slane %v2916_v21, 4  ;;  %v2682_v55 = vpop.permute.xlu0 %2681  ;;  %v3499_v57 = vpack.c.bf16 %v5897_v46, %v5897_v46  ;;  %v3048_v61 = vrot.slane %v2911_v4, 4 }
 0x4f2   : > { %v3041_v50 = vadd.f32 %v3040_v29, %v3039_v30  ;;  %v3044_v52 = vrot.slane %v3043_v54, 2  ;;  %v2912_v48 = vmul.f32 %v5524_v31, %v2682_v55  ;;  %v3074_v53 = vrot.slane %v3073_v27, 2  ;;  %v5898_v31 = vld [vmem:[#allocation8_spill] sm:$0xff] }
 0x4f3   : > { %v3159_v3 = vsel %vm2446_vm13, %v3017_v1, %v3158_v7  ;;  %v3079_v60 = vadd.f32 %v3078_v24, %v2916_v21  ;;  %v3084_v22 = vrot.slane %v2917_v58, 4  ;;  %v2724_v36 = vpop.permute.xlu1 %2723  ;;  %v3049_v35 = vadd.f32 %v3048_v61, %v2911_v4 }
 0x4f4   : > { %3179 = vst [vmem:[%s5598_s22 + $0x8] sm:$0xff] %v3159_v3  ;;  %v3162_v20 = vsel %vm2438_vm9, %v3041_v50, %v3161_v63  ;;  %v3045_v12 = vadd.f32 %v3044_v52, %v3043_v54  ;;  %v3054_v39 = vrot.slane %v2912_v48, 4  ;;  %v2918_v42 = vmul.f32 %v2886_v38, %v2724_v36 }
 0x4f5   : > { %v3080_v10 = vrot.slane %v3079_v60, 2  ;;  %v3085_v6 = vadd.f32 %v3084_v22, %v2917_v58  ;;  %v2696_v2 = vpop.permute.xlu0 %2695  ;;  %v3501_v33 = vpack.c.bf16 %v5898_v31, %v5898_v31  ;;  %v3050_v23 = vrot.slane %v3049_v35, 2 }
 0x4f6   : > { %v3046_v16 = vrot.slane %v3045_v12, 1  ;;  %v3055_v47 = vadd.f32 %v3054_v39, %v2912_v48  ;;  %v2914_v49 = vmul.f32 %v5542_v40, %v2696_v2  ;;  %v3075_v5 = vadd.f32 %v3074_v53, %v3073_v27 }
 0x4f7   : > { %v3086_v32 = vrot.slane %v3085_v6, 2  ;;  %v3090_v43 = vrot.slane %v2918_v42, 4  ;;  %v2887_v25 = vunpack.c.l.bf16 %v3499_v57  ;;  %v2731_v18 = vpop.permute.xlu1 %2730  ;;  %v3051_v37 = vadd.f32 %v3050_v23, %v3049_v35 }
 0x4f8   : > { %v3047_v8 = vadd.f32 %v3046_v16, %v3045_v12  ;;  %v3056_v26 = vrot.slane %v3055_v47, 2  ;;  %v3066_v15 = vrot.slane %v2914_v49, 4  ;;  %v3081_v13 = vadd.f32 %v3080_v10, %v3079_v60 }
 0x4f9   : > { %v3091_v34 = vadd.f32 %v3090_v43, %v2918_v42  ;;  %v2919_v28 = vmul.f32 %v2887_v25, %v2731_v18  ;;  %v2577_v62 = vpop.permute.xlu0 %2576  ;;  %v2889_v56 = vunpack.c.l.bf16 %v3501_v33  ;;  %v3052_v45 = vrot.slane %v3051_v37, 1 }
 0x4fa   : > { %v3163_v19 = vsel %vm2440_vm10, %v3047_v8, %v3162_v20  ;;  %v3057_v38 = vadd.f32 %v3056_v26, %v3055_v47  ;;  %v3067_v7 = vadd.f32 %v3066_v15, %v2914_v49  ;;  %v3076_v40 = vrot.slane %v3075_v5, 1 }
 0x4fb   : > { %v3087_v44 = vadd.f32 %v3086_v32, %v3085_v6  ;;  %v3092_v30 = vrot.slane %v3091_v34, 2  ;;  %v3096_v51 = vrot.slane %v2919_v28, 4  ;;  %v2738_v17 = vpop.permute.xlu1 %2737  ;;  %v3053_v9 = vadd.f32 %v3052_v45, %v3051_v37 }
 0x4fc   : > { %v3058_v27 = vrot.slane %v3057_v38, 1  ;;  %v3068_v21 = vrot.slane %v3067_v7, 2  ;;  %v2897_v11 = vmul.f32 %v5486_v0, %v2577_v62  ;;  %v3082_v63 = vrot.slane %v3081_v13, 1 }
 0x4fd   : > { %v3093_v29 = vadd.f32 %v3092_v30, %v3091_v34  ;;  %v3097_v54 = vadd.f32 %v3096_v51, %v2919_v28  ;;  %v2920_v4 = vmul.f32 %v5558_v14, %v2738_v17  ;;  %v2689_v1 = vpop.permute.xlu0 %2688  ;;  %v3164_v24 = vsel %vm2442_vm11, %v3053_v9, %v3163_v19 }
 0x4fe   : > { %v3059_v58 = vadd.f32 %v3058_v27, %v3057_v38  ;;  %v3069_v55 = vadd.f32 %v3068_v21, %v3067_v7  ;;  %v2964_v46 = vrot.slane %v2897_v11, 4  ;;  %v3088_v57 = vrot.slane %v3087_v44, 1 }
 0x4ff   : > { %v3098_v50 = vrot.slane %v3097_v54, 2  ;;  %v3102_v52 = vrot.slane %v2920_v4, 4  ;;  %v2913_v61 = vmul.f32 %v5530_v59, %v2689_v1  ;;  %v2745_v48 = vpop.permute.xlu1 %2744  ;;  %v3094_v22 = vrot.slane %v3093_v29, 1 }
 0x500   : > { %v3165_v3 = vsel %vm2444_vm12, %v3059_v58, %v3164_v24  ;;  %v3070_v0 = vrot.slane %v3069_v55, 1  ;;  %v2965_v53 = vadd.f32 %v2964_v46, %v2897_v11  ;;  %v2921_v60 = vmul.f32 %v2889_v56, %v2745_v48 }
 0x501   : > { %v3099_v36 = vadd.f32 %v3098_v50, %v3097_v54  ;;  %v3103_v14 = vadd.f32 %v3102_v52, %v2920_v4  ;;  %v3060_v20 = vrot.slane %v2913_v61, 4  ;;  %v3077_v12 = vadd.f32 %v3076_v40, %v3075_v5 }
 0x502   : > { %v3071_v35 = vadd.f32 %v3070_v0, %v3069_v55  ;;  %v2966_v39 = vrot.slane %v2965_v53, 2  ;;  %v3108_v10 = vrot.slane %v2921_v60, 4  ;;  %v3083_v6 = vadd.f32 %v3082_v63, %v3081_v13 }
 0x503   : > { %v3100_v42 = vrot.slane %v3099_v36, 1  ;;  %v3104_v2 = vrot.slane %v3103_v14, 2  ;;  %v3061_v31 = vadd.f32 %v3060_v20, %v2913_v61  ;;  %v3089_v33 = vadd.f32 %v3088_v57, %v3087_v44 }
 0x504   : > { %v3167_v59 = vsel %vm2434_vm7, %v3077_v12, %v3071_v35  ;;  %v2967_v16 = vadd.f32 %v2966_v39, %v2965_v53  ;;  %v3109_v23 = vadd.f32 %v3108_v10, %v2921_v60  ;;  %v3095_v47 = vadd.f32 %v3094_v22, %v3093_v29 }
 0x505   : > { %v3168_v49 = vsel %vm2436_vm8, %v3083_v6, %v3167_v59  ;;  %v3105_v32 = vadd.f32 %v3104_v2, %v3103_v14  ;;  %v3062_v43 = vrot.slane %v3061_v31, 2  ;;  %v3101_v25 = vadd.f32 %v3100_v42, %v3099_v36 }
 0x506   : > { %v3169_v5 = vsel %vm2438_vm9, %v3089_v33, %v3168_v49  ;;  %v2968_v18 = vrot.slane %v2967_v16, 1  ;;  %v3110_v8 = vrot.slane %v3109_v23, 2 }
 0x507   : > { %v3170_v37 = vsel %vm2440_vm10, %v3095_v47, %v3169_v5  ;;  %v3106_v26 = vrot.slane %v3105_v32, 1  ;;  %v3063_v15 = vadd.f32 %v3062_v43, %v3061_v31 }
 0x508   : > { %v3171_v13 = vsel %vm2442_vm11, %v3101_v25, %v3170_v37  ;;  %v2969_v34 = vadd.f32 %v2968_v18, %v2967_v16  ;;  %v3111_v28 = vadd.f32 %v3110_v8, %v3109_v23 }
 0x509   : > { %v3107_v62 = vadd.f32 %v3106_v26, %v3105_v32  ;;  %v3064_v56 = vrot.slane %v3063_v15, 1 }
 0x50a   : > { %v3152_v19 = vsel %vm2446_vm13, %v2969_v34, %v5570_v41  ;;  %v3112_v45 = vrot.slane %v3111_v28, 1 }
 0x50b   : > { %3178 = vst [vmem:[%s5598_s22] sm:$0xff] %v3152_v19  ;;  %v3172_v38 = vsel %vm2444_vm12, %v3107_v62, %v3171_v13  ;;  %v3065_v7 = vadd.f32 %v3064_v56, %v3063_v15 }
 0x50c   : > { %v3113_v40 = vadd.f32 %v3112_v45, %v3111_v28 }
 0x50d   : > { %v3166_v44 = vsel %vm2446_vm13, %v3065_v7, %v3165_v3 }
 0x50e   : > { %3180 = vst [vmem:[%s5598_s22 + $0x10] sm:$0xff] %v3166_v44  ;;  %v3173_v41 = vsel %vm2446_vm13, %v3113_v40, %v3172_v38 }
 0x50f   : > { %3181 = vst [vmem:[%s5598_s22 + $0x18] sm:$0xff] %v3173_v41 }
 0x510   : > { %3999 = shalt.err (!%p3996_p4)
}
 0x511   : > { %s4000_s18 = scalar_lea.hbm %s5625_s27, 512  ;;  %s4004_s21 = scalar_lea.hbm %s5684_s8, 1024 }
 0x512   : > { %p4001_p7 = scmp.ne.s32.totalorder %s5625_s27, %s4000_s18  ;;  %p4005_p10 = scmp.lt.u32.totalorder %s5625_s27, %s5684_s8 }
 0x513   : > { %p4006_p11 = scmp.lt.u32.totalorder %s4004_s21, %s4000_s18  ;;  %p4008_p13 = scmp.lt.u32.totalorder %s4000_s18, %s5625_s27 }
 0x514   : > { %p4002_p8 = pnand %p4001_p7, %p4140_p5 }
 0x515   : > { %p4007_p12 = por %p4006_p11, %p4005_p10 }
 0x516   : > { %p4003_p9 = pneg %p4002_p8 }
 0x517   : > { %p4009_p0 = por %p4008_p13, %p4007_p12 }
 0x519   : > { %p4010_p1 = pnand %p4009_p0, %p4003_p9 }
 0x51b   : > { %4013 = shalt.err (!%p4010_p1)
}
 0x51c   : > { %s4052_s25 = smov 128   ;;  %s4053_s26 = smov 8  }
 0x51d   : > { %3801 = dma.vmem_to_hbm [thread:$0]  (%p4140_p5), %s5627_s24, 512, %s5625_s27, %s5635_s7, %s4052_s25, %s4052_s25, %s4053_s26  }
 0x51e PF: > { %p3807_p2 = scmp.ge.s32.totalorder %s4048_s10, 2  ;;  %s3211_s28 = sand.u32 1, %s4036_s29  }
 0x51f   : > { %s3212_s11 = scalar_lea.sflag [#allocation4], %s3211_s28 }
 0x520   : > { %p3804_p3 = pnand %p3807_p2, %p4144_p6 }
 0x522   : > { %4031 = dma.done.wait (!%p3804_p3), %s3212_s11, 512  }
 0x523   : > { %4033 = vsyncadd (!%p3804_p3), %s3212_s11, 4294966784  ;;  %p20_p4 = scmp.ge.s32.totalorder %s4127_s12, 4   ;;  %s5899_s29 = smov %s4040_s30 }
 0x524   : > { %s5900_s30 = smov %s4044_s9  ;;  %s5901_s9 = smov %s4138_s15 }
 0x525   : > { %s5902_s10 = smov %s4127_s12  ;;  %22 = sbr.rel (!%p20_p4) target bundleno = 6 (0x6), region = 92 }
 0x52c   :  { %3217 = vsyncpa [#allocation4], 1 }
 0x52d   :  { %3219 = vsyncpa [#allocation4 + $0x1], 1 }

</bundles_post_ra>
